<compile_context>
chip_gen: v7x
topology: tpu7x:2x2x1
jax: 0.10.0
libtpu: 0.0.40
codegen_flags: <defaults>
</compile_context>

<pallas_src>
import math

import numpy as np
import jax
import jax.numpy as jnp
from jax.experimental import pallas as pl
from jax.experimental.pallas import tpu as pltpu

# ---- model hyper-parameters (match the PyTorch construction) ----------------
HIDDEN_SIZES = [128, 64, 32]
SIGNAL_LENGTH = 320          # in_features of the first shared Linear
NUM_HEADS = 4
CONV_C1 = 8
CONV_C2 = 16
L_IN = SIGNAL_LENGTH // CONV_C2   # 20: raw per-signal length fed to the conv stack

D = HIDDEN_SIZES[1]          # 64, attention embed dim
H = NUM_HEADS
HD = D // H                  # 16, head dim

# ---- packed-buffer layout (shared between to_kernel_params and the kernel) --
ROW_B1, ROW_B2, ROW_FC1B, ROW_FC2B, ROW_CLS1B, ROW_CLS2W, ROW_CLS2B = range(7)
ATTN_B_BASE = (7, 11)        # rows of [bq, bk, bv, bo] for attn1 / attn2 in the vec pack
ATTN_W_BASE = (0, 4 * D)     # row offsets of [wq; wk; wv; wo] blocks in the attn pack
VEC_ROWS = 16                # (16, 320) vector pack


def _vmem():
    return pl.BlockSpec(memory_space=pltpu.MemorySpace.VMEM)


# ========================= fused forward (one kernel) =========================

def multisignal_forward(x, kp):
    """x: (batch, num_signals, L_IN) float32 -> (batch, num_signals) float32."""
    B, S, L = x.shape
    # Channel-major flatten matches .view(BN, signal_length) only under this condition.
    assert L == L_IN and CONV_C2 * L == SIGNAL_LENGTH, (L, L_IN, SIGNAL_LENGTH)
    BN = B * S
    scale = 1.0 / math.sqrt(HD)

    def fused_kernel(x_ref, wc1_ref, wc2_ref, fc1_ref, fc2_ref, cls1_ref,
                     attn_ref, vec_ref, out_ref):
        f32 = jnp.float32
        # NOTE: at real batch sizes cast matmul operands to bf16 (f32 accumulation); kept
        # f32 here for parity — the MXU has huge slack at BN=8.

        # ---- conv1 + conv2 (k=3, pad=1) as banded matmuls -> lane-dense (BN, 320) ----
        x2 = x_ref[...]                                               # (BN, 20)
        h1 = jnp.dot(x2, wc1_ref[...], preferred_element_type=f32) \
            + vec_ref[ROW_B1:ROW_B1 + 1, :CONV_C1 * L]                # (BN, 160)
        h1 = jnp.maximum(h1, 0.0)
        feat = jnp.dot(h1, wc2_ref[...], preferred_element_type=f32) \
            + vec_ref[ROW_B2:ROW_B2 + 1, :]                           # (BN, 320)
        feat = jnp.maximum(feat, 0.0)

        # ---- shared MLP: Linear(320->128)+ReLU, Linear(128->64)+ReLU ----
        hh = jnp.dot(feat, fc1_ref[...], preferred_element_type=f32) \
            + vec_ref[ROW_FC1B:ROW_FC1B + 1, :HIDDEN_SIZES[0]]
        hh = jnp.maximum(hh, 0.0)
        shared = jnp.dot(hh, fc2_ref[...], preferred_element_type=f32) \
            + vec_ref[ROW_FC2B:ROW_FC2B + 1, :D]
        shared = jnp.maximum(shared, 0.0)                             # (BN, 64)

        # ---- head lane-masks (VPU compares; no lane slicing / rotates anywhere) ----
        lane = jax.lax.broadcasted_iota(jnp.int32, (1, D), 1)
        head_masks = [((lane >= h * HD) & (lane < (h + 1) * HD)).astype(f32)
                      for h in range(H)]

        # ---- MultiheadAttention(64, 4 heads, batch_first), self-attention ----
        def mha(x2d, w_base, b_base):
            def proj(i):
                w = attn_ref[w_base + i * D: w_base + (i + 1) * D, :]   # (64, 64)
                b = vec_ref[b_base + i: b_base + i + 1, :D]             # (1, 64)
                return jnp.dot(x2d, w, preferred_element_type=f32) + b
            q = proj(0).reshape(B, S, D)
            k = proj(1).reshape(B, S, D)
            v = proj(2).reshape(B, S, D)
            o = jnp.zeros((B, S, D), f32)
            for h in range(H):
                m = head_masks[h]
                kh = k * m                                   # only head-h lanes contribute
                vh = v * m                                   # head-h output stays in its lanes
                s = jnp.einsum('bqd,bkd->bqk', q, kh,
                               preferred_element_type=f32) * scale
                s = s - jnp.max(s, axis=-1, keepdims=True)
                e = jnp.exp(s)
                p = e / jnp.sum(e, axis=-1, keepdims=True)   # exact softmax (parity)
                o = o + jnp.einsum('bqk,bkd->bqd', p, vh,
                                   preferred_element_type=f32)
            wo = attn_ref[w_base + 3 * D: w_base + 4 * D, :]
            bo = vec_ref[b_base + 3: b_base + 4, :D]
            return jnp.dot(o.reshape(BN, D), wo, preferred_element_type=f32) + bo

        a1 = mha(shared, ATTN_W_BASE[0], ATTN_B_BASE[0])
        a2 = mha(a1, ATTN_W_BASE[1], ATTN_B_BASE[1])

        # ---- classifier: Linear(64->32)+ReLU, Linear(32->1)+Sigmoid ----
        ch = jnp.dot(a2, cls1_ref[...], preferred_element_type=f32) \
            + vec_ref[ROW_CLS1B:ROW_CLS1B + 1, :HIDDEN_SIZES[2]]
        ch = jnp.maximum(ch, 0.0)                                    # (BN, 32)
        # N=1 Linear as VPU multiply + lane reduce (no 1-wide MXU matmul).
        logit = jnp.sum(ch * vec_ref[ROW_CLS2W:ROW_CLS2W + 1, :HIDDEN_SIZES[2]],
                        axis=-1, keepdims=True) \
            + vec_ref[ROW_CLS2B:ROW_CLS2B + 1, 0:1]                  # (BN, 1)
        out_ref[...] = pl.reciprocal(1.0 + jnp.exp(-logit), approx=True)

    args = (x.reshape(BN, L).astype(jnp.float32),
            kp['wc1'], kp['wc2'], kp['fc1'], kp['fc2'], kp['cls1'],
            kp['attn'], kp['vec'])

    # Gridless single invocation: at BN=8 the workload is launch/DMA-prologue bound.
    # At real batch sizes: add a BN grid axis, dimension_semantics=("parallel",) (v7x 2 TCs),
    # block >=256 rows on v6e/v7x, 128 on v5e.
    probs = pl.pallas_call(
        fused_kernel,
        out_shape=jax.ShapeDtypeStruct((BN, 1), jnp.float32),
        in_specs=[_vmem()] * len(args),
        out_specs=_vmem(),
    )(*args)

    return probs.reshape(B, S)   # == outputs.squeeze(-1)


# ===================== deterministic parameter init ===========================

def _uniform(key, shape, fan_in):
    bound = 1.0 / math.sqrt(fan_in)
    return jax.random.uniform(key, shape, jnp.float32, -bound, bound)


def init_pt_params(key):
    """Parameters in PyTorch layout (shapes only matter; deterministic synthetic init)."""
    ks = jax.random.split(key, 20)
    p = {
        'conv1_w': _uniform(ks[0], (CONV_C1, 1, 3), 3),
        'conv1_b': _uniform(ks[1], (CONV_C1,), 3),
        'conv2_w': _uniform(ks[2], (CONV_C2, CONV_C1, 3), CONV_C1 * 3),
        'conv2_b': _uniform(ks[3], (CONV_C2,), CONV_C1 * 3),
        'fc1_w': _uniform(ks[4], (HIDDEN_SIZES[0], SIGNAL_LENGTH), SIGNAL_LENGTH),
        'fc1_b': _uniform(ks[5], (HIDDEN_SIZES[0],), SIGNAL_LENGTH),
        'fc2_w': _uniform(ks[6], (HIDDEN_SIZES[1], HIDDEN_SIZES[0]), HIDDEN_SIZES[0]),
        'fc2_b': _uniform(ks[7], (HIDDEN_SIZES[1],), HIDDEN_SIZES[0]),
        'cls1_w': _uniform(ks[8], (HIDDEN_SIZES[2], HIDDEN_SIZES[1]), HIDDEN_SIZES[1]),
        'cls1_b': _uniform(ks[9], (HIDDEN_SIZES[2],), HIDDEN_SIZES[1]),
        'cls2_w': _uniform(ks[10], (1, HIDDEN_SIZES[2]), HIDDEN_SIZES[2]),
        'cls2_b': _uniform(ks[11], (1,), HIDDEN_SIZES[2]),
    }
    for i, name in enumerate(['attn1', 'attn2']):
        base = 12 + 4 * i
        p[f'{name}_in_w'] = _uniform(ks[base + 0], (3 * D, D), D)
        p[f'{name}_in_b'] = _uniform(ks[base + 1], (3 * D,), D)
        p[f'{name}_out_w'] = _uniform(ks[base + 2], (D, D), D)
        p[f'{name}_out_b'] = _uniform(ks[base + 3], (D,), D)
    return p


# ============== host-side weight transforms for the fused kernel ==============

def _conv_as_band_matmul(w, b, L):
    """Conv1d(k=3, pad=1, stride=1) as  flat_in @ M + bias_row, channel-major flatten
    (feature index = c*L + l) on both input and output sides."""
    w = np.asarray(w, np.float32)
    b = np.asarray(b, np.float32)
    cout, cin, K = w.shape
    M = np.zeros((cin * L, cout * L), np.float32)
    lo = np.arange(L)
    for co in range(cout):
        for ci in range(cin):
            for k in range(K):
                li = lo + k - (K // 2)
                valid = (li >= 0) & (li < L)
                M[ci * L + li[valid], co * L + lo[valid]] = w[co, ci, k]
    bias = np.repeat(b, L)                     # bias[co*L + lo] = b[co]
    return M, bias


def _pack_rows(rows, width, total_rows):
    buf = np.zeros((total_rows, width), np.float32)
    for i, r in enumerate(rows):
        r = np.asarray(r, np.float32).reshape(-1)
        buf[i, :r.shape[0]] = r
    return buf


def to_kernel_params(pt):
    """Convert PyTorch-layout params into the kernel's packed layouts."""
    wc1, b1 = _conv_as_band_matmul(pt['conv1_w'], pt['conv1_b'], L_IN)   # (20,160),(160,)
    wc2, b2 = _conv_as_band_matmul(pt['conv2_w'], pt['conv2_b'], L_IN)   # (160,320),(320,)

    attn_w_blocks, attn_b_rows = [], []
    for name in ('attn1', 'attn2'):
        in_w = np.asarray(pt[f'{name}_in_w'], np.float32)
        in_b = np.asarray(pt[f'{name}_in_b'], np.float32)
        out_w = np.asarray(pt[f'{name}_out_w'], np.float32)
        out_b = np.asarray(pt[f'{name}_out_b'], np.float32)
        attn_w_blocks += [in_w[:D].T, in_w[D:2 * D].T, in_w[2 * D:].T, out_w.T]
        attn_b_rows += [in_b[:D], in_b[D:2 * D], in_b[2 * D:], out_b]

    vec_rows = [b1, b2, pt['fc1_b'], pt['fc2_b'], pt['cls1_b'],
                np.asarray(pt['cls2_w']).reshape(-1), pt['cls2_b']] + attn_b_rows

    return {
        'wc1': jnp.asarray(wc1),                                        # (20, 160)
        'wc2': jnp.asarray(wc2),                                        # (160, 320)
        'fc1': jnp.asarray(np.asarray(pt['fc1_w'], np.float32).T),      # (320, 128)
        'fc2': jnp.asarray(np.asarray(pt['fc2_w'], np.float32).T),      # (128, 64)
        'cls1': jnp.asarray(np.asarray(pt['cls1_w'], np.float32).T),    # (64, 32)
        'attn': jnp.asarray(np.concatenate(attn_w_blocks, axis=0)),     # (512, 64)
        'vec': jnp.asarray(_pack_rows(vec_rows, SIGNAL_LENGTH, VEC_ROWS)),  # (16, 320)
    }


# ===================== pure-JAX reference (for checking) ======================

def reference_forward(x, pt):
    B, S, L = x.shape
    BN = B * S

    def conv1d(xin, w, b):   # xin: (N, Cin, L), w: (Cout, Cin, 3)
        y = jax.lax.conv_general_dilated(
            xin, w, window_strides=(1,), padding=((1, 1),),
            dimension_numbers=('NCH', 'OIH', 'NCH'))
        return y + b[None, :, None]

    h = jax.nn.relu(conv1d(x.reshape(BN, 1, L), pt['conv1_w'], pt['conv1_b']))
    h = jax.nn.relu(conv1d(h, pt['conv2_w'], pt['conv2_b']))
    feat = h.reshape(BN, -1)                                    # channel-major flatten
    h = jax.nn.relu(feat @ pt['fc1_w'].T + pt['fc1_b'])
    h = jax.nn.relu(h @ pt['fc2_w'].T + pt['fc2_b'])
    seq = h.reshape(B, S, -1)

    def mha(xin, w_in, b_in, w_o, b_o):
        Dm = xin.shape[-1]
        Hh, hd = NUM_HEADS, Dm // NUM_HEADS
        q = xin @ w_in[:Dm].T + b_in[:Dm]
        k = xin @ w_in[Dm:2 * Dm].T + b_in[Dm:2 * Dm]
        v = xin @ w_in[2 * Dm:].T + b_in[2 * Dm:]
        split = lambda t: t.reshape(B, S, Hh, hd).transpose(0, 2, 1, 3)
        q, k, v = split(q), split(k), split(v)
        s = jnp.einsum('bhqd,bhkd->bhqk', q, k) / math.sqrt(hd)
        p = jax.nn.softmax(s, axis=-1)
        o = jnp.einsum('bhqk,bhkd->bhqd', p, v).transpose(0, 2, 1, 3).reshape(B, S, Dm)
        return o @ w_o.T + b_o

    a = mha(seq, pt['attn1_in_w'], pt['attn1_in_b'], pt['attn1_out_w'], pt['attn1_out_b'])
    a = mha(a, pt['attn2_in_w'], pt['attn2_in_b'], pt['attn2_out_w'], pt['attn2_out_b'])
    h = jax.nn.relu(a @ pt['cls1_w'].T + pt['cls1_b'])
    out = jax.nn.sigmoid(h @ pt['cls2_w'].T + pt['cls2_b'])
    return out.squeeze(-1)


# ================================= main =======================================

if __name__ == "__main__":
    key = jax.random.PRNGKey(0)
    k_x, k_p = jax.random.split(key)

    batch, num_signals = 2, 4
    x = jax.random.normal(k_x, (batch, num_signals, L_IN), jnp.float32)

    pt_params = init_pt_params(k_p)
    kernel_params = to_kernel_params(pt_params)

    out = multisignal_forward(x, kernel_params)
    out = jax.block_until_ready(out)
    assert out.shape == (batch, num_signals), out.shape

    ref = jax.block_until_ready(reference_forward(x, pt_params))
    max_err = float(jnp.max(jnp.abs(out - ref)))
    assert max_err < 1e-2, f"kernel/reference mismatch: {max_err}"

    print("KERNEL_OK")
</pallas_src>

<mosaic_0001>
module attributes {stable_mosaic.version = 11 : i64} {
  func.func @fused_kernel(%arg0: memref<8x20xf32, #tpu.memory_space<vmem>>, %arg1: memref<20x160xf32, #tpu.memory_space<vmem>>, %arg2: memref<160x320xf32, #tpu.memory_space<vmem>>, %arg3: memref<320x128xf32, #tpu.memory_space<vmem>>, %arg4: memref<128x64xf32, #tpu.memory_space<vmem>>, %arg5: memref<64x32xf32, #tpu.memory_space<vmem>>, %arg6: memref<512x64xf32, #tpu.memory_space<vmem>>, %arg7: memref<16x320xf32, #tpu.memory_space<vmem>>, %arg8: memref<8x1xf32, #tpu.memory_space<vmem>>) attributes {dimension_semantics = [], scalar_prefetch = 0 : i64, scratch_operands = 0 : i64, tpu.core_type = #tpu.core_type<tc>} {
    %c0 = arith.constant 0 : index
    %c0_0 = arith.constant 0 : index
    %0 = vector.load %arg0[%c0, %c0_0] : memref<8x20xf32, #tpu.memory_space<vmem>>, vector<8x20xf32>
    %c0_1 = arith.constant 0 : index
    %c0_2 = arith.constant 0 : index
    %1 = vector.load %arg1[%c0_1, %c0_2] : memref<20x160xf32, #tpu.memory_space<vmem>>, vector<20x160xf32>
    %cst = arith.constant dense<0.000000e+00> : vector<8x160xf32>
    %2 = tpu.matmul %0, %1, %cst {dimension_numbers = #tpu.dot_dimension_numbers<[1], [0], [0], [1], [0, 0, 1, 1], [], []>} : vector<8x20xf32>, vector<20x160xf32>, vector<8x160xf32> -> vector<8x160xf32>
    %c0_3 = arith.constant 0 : index
    %c0_4 = arith.constant 0 : index
    %3 = vector.load %arg7[%c0_3, %c0_4] : memref<16x320xf32, #tpu.memory_space<vmem>>, vector<1x160xf32>
    %4 = vector.broadcast %3 : vector<1x160xf32> to vector<8x160xf32>
    %5 = arith.addf %2, %4 : vector<8x160xf32>
    %cst_5 = arith.constant 0.000000e+00 : f32
    %6 = vector.broadcast %cst_5 : f32 to vector<8x160xf32>
    %7 = arith.maximumf %5, %6 : vector<8x160xf32>
    %c0_6 = arith.constant 0 : index
    %c0_7 = arith.constant 0 : index
    %8 = vector.load %arg2[%c0_6, %c0_7] : memref<160x320xf32, #tpu.memory_space<vmem>>, vector<160x320xf32>
    %cst_8 = arith.constant dense<0.000000e+00> : vector<8x320xf32>
    %9 = tpu.matmul %7, %8, %cst_8 {dimension_numbers = #tpu.dot_dimension_numbers<[1], [0], [0], [1], [0, 0, 1, 1], [], []>} : vector<8x160xf32>, vector<160x320xf32>, vector<8x320xf32> -> vector<8x320xf32>
    %c1 = arith.constant 1 : index
    %c0_9 = arith.constant 0 : index
    %10 = vector.load %arg7[%c1, %c0_9] : memref<16x320xf32, #tpu.memory_space<vmem>>, vector<1x320xf32>
    %11 = vector.broadcast %10 : vector<1x320xf32> to vector<8x320xf32>
    %12 = arith.addf %9, %11 : vector<8x320xf32>
    %cst_10 = arith.constant 0.000000e+00 : f32
    %13 = vector.broadcast %cst_10 : f32 to vector<8x320xf32>
    %14 = arith.maximumf %12, %13 : vector<8x320xf32>
    %c0_11 = arith.constant 0 : index
    %c0_12 = arith.constant 0 : index
    %15 = vector.load %arg3[%c0_11, %c0_12] : memref<320x128xf32, #tpu.memory_space<vmem>>, vector<320x128xf32>
    %cst_13 = arith.constant dense<0.000000e+00> : vector<8x128xf32>
    %16 = tpu.matmul %14, %15, %cst_13 {dimension_numbers = #tpu.dot_dimension_numbers<[1], [0], [0], [1], [0, 0, 1, 1], [], []>} : vector<8x320xf32>, vector<320x128xf32>, vector<8x128xf32> -> vector<8x128xf32>
    %c2 = arith.constant 2 : index
    %c0_14 = arith.constant 0 : index
    %17 = vector.load %arg7[%c2, %c0_14] : memref<16x320xf32, #tpu.memory_space<vmem>>, vector<1x128xf32>
    %18 = vector.broadcast %17 : vector<1x128xf32> to vector<8x128xf32>
    %19 = arith.addf %16, %18 : vector<8x128xf32>
    %cst_15 = arith.constant 0.000000e+00 : f32
    %20 = vector.broadcast %cst_15 : f32 to vector<8x128xf32>
    %21 = arith.maximumf %19, %20 : vector<8x128xf32>
    %c0_16 = arith.constant 0 : index
    %c0_17 = arith.constant 0 : index
    %22 = vector.load %arg4[%c0_16, %c0_17] : memref<128x64xf32, #tpu.memory_space<vmem>>, vector<128x64xf32>
    %cst_18 = arith.constant dense<0.000000e+00> : vector<8x64xf32>
    %23 = tpu.matmul %21, %22, %cst_18 {dimension_numbers = #tpu.dot_dimension_numbers<[1], [0], [0], [1], [0, 0, 1, 1], [], []>} : vector<8x128xf32>, vector<128x64xf32>, vector<8x64xf32> -> vector<8x64xf32>
    %c3 = arith.constant 3 : index
    %c0_19 = arith.constant 0 : index
    %24 = vector.load %arg7[%c3, %c0_19] : memref<16x320xf32, #tpu.memory_space<vmem>>, vector<1x64xf32>
    %25 = vector.broadcast %24 : vector<1x64xf32> to vector<8x64xf32>
    %26 = arith.addf %23, %25 : vector<8x64xf32>
    %cst_20 = arith.constant 0.000000e+00 : f32
    %27 = vector.broadcast %cst_20 : f32 to vector<8x64xf32>
    %28 = arith.maximumf %26, %27 : vector<8x64xf32>
    %29 = tpu.iota {dimensions = array<i32: 1>} : vector<1x64xi32>
    %c0_i32 = arith.constant 0 : i32
    %30 = vector.broadcast %c0_i32 : i32 to vector<1x64xi32>
    %31 = arith.cmpi sge, %29, %30 : vector<1x64xi32>
    %c16_i32 = arith.constant 16 : i32
    %32 = vector.broadcast %c16_i32 : i32 to vector<1x64xi32>
    %33 = arith.cmpi slt, %29, %32 : vector<1x64xi32>
    %34 = arith.andi %31, %33 : vector<1x64xi1>
    %35 = arith.extui %34 : vector<1x64xi1> to vector<1x64xi32>
    %36 = arith.sitofp %35 : vector<1x64xi32> to vector<1x64xf32>
    %c16_i32_21 = arith.constant 16 : i32
    %37 = vector.broadcast %c16_i32_21 : i32 to vector<1x64xi32>
    %38 = arith.cmpi sge, %29, %37 : vector<1x64xi32>
    %c32_i32 = arith.constant 32 : i32
    %39 = vector.broadcast %c32_i32 : i32 to vector<1x64xi32>
    %40 = arith.cmpi slt, %29, %39 : vector<1x64xi32>
    %41 = arith.andi %38, %40 : vector<1x64xi1>
    %42 = arith.extui %41 : vector<1x64xi1> to vector<1x64xi32>
    %43 = arith.sitofp %42 : vector<1x64xi32> to vector<1x64xf32>
    %c32_i32_22 = arith.constant 32 : i32
    %44 = vector.broadcast %c32_i32_22 : i32 to vector<1x64xi32>
    %45 = arith.cmpi sge, %29, %44 : vector<1x64xi32>
    %c48_i32 = arith.constant 48 : i32
    %46 = vector.broadcast %c48_i32 : i32 to vector<1x64xi32>
    %47 = arith.cmpi slt, %29, %46 : vector<1x64xi32>
    %48 = arith.andi %45, %47 : vector<1x64xi1>
    %49 = arith.extui %48 : vector<1x64xi1> to vector<1x64xi32>
    %50 = arith.sitofp %49 : vector<1x64xi32> to vector<1x64xf32>
    %c48_i32_23 = arith.constant 48 : i32
    %51 = vector.broadcast %c48_i32_23 : i32 to vector<1x64xi32>
    %52 = arith.cmpi sge, %29, %51 : vector<1x64xi32>
    %c64_i32 = arith.constant 64 : i32
    %53 = vector.broadcast %c64_i32 : i32 to vector<1x64xi32>
    %54 = arith.cmpi slt, %29, %53 : vector<1x64xi32>
    %55 = arith.andi %52, %54 : vector<1x64xi1>
    %56 = arith.extui %55 : vector<1x64xi1> to vector<1x64xi32>
    %57 = arith.sitofp %56 : vector<1x64xi32> to vector<1x64xf32>
    %c0_24 = arith.constant 0 : index
    %c0_25 = arith.constant 0 : index
    %58 = vector.load %arg6[%c0_24, %c0_25] : memref<512x64xf32, #tpu.memory_space<vmem>>, vector<64x64xf32>
    %c7 = arith.constant 7 : index
    %c0_26 = arith.constant 0 : index
    %59 = vector.load %arg7[%c7, %c0_26] : memref<16x320xf32, #tpu.memory_space<vmem>>, vector<1x64xf32>
    %cst_27 = arith.constant dense<0.000000e+00> : vector<8x64xf32>
    %60 = tpu.matmul %28, %58, %cst_27 {dimension_numbers = #tpu.dot_dimension_numbers<[1], [0], [0], [1], [0, 0, 1, 1], [], []>} : vector<8x64xf32>, vector<64x64xf32>, vector<8x64xf32> -> vector<8x64xf32>
    %61 = vector.broadcast %59 : vector<1x64xf32> to vector<8x64xf32>
    %62 = arith.addf %60, %61 : vector<8x64xf32>
    %63 = vector.shape_cast %62 : vector<8x64xf32> to vector<2x4x64xf32>
    %c64 = arith.constant 64 : index
    %c0_28 = arith.constant 0 : index
    %64 = vector.load %arg6[%c64, %c0_28] : memref<512x64xf32, #tpu.memory_space<vmem>>, vector<64x64xf32>
    %c8 = arith.constant 8 : index
    %c0_29 = arith.constant 0 : index
    %65 = vector.load %arg7[%c8, %c0_29] : memref<16x320xf32, #tpu.memory_space<vmem>>, vector<1x64xf32>
    %cst_30 = arith.constant dense<0.000000e+00> : vector<8x64xf32>
    %66 = tpu.matmul %28, %64, %cst_30 {dimension_numbers = #tpu.dot_dimension_numbers<[1], [0], [0], [1], [0, 0, 1, 1], [], []>} : vector<8x64xf32>, vector<64x64xf32>, vector<8x64xf32> -> vector<8x64xf32>
    %67 = vector.broadcast %65 : vector<1x64xf32> to vector<8x64xf32>
    %68 = arith.addf %66, %67 : vector<8x64xf32>
    %69 = vector.shape_cast %68 : vector<8x64xf32> to vector<2x4x64xf32>
    %c128 = arith.constant 128 : index
    %c0_31 = arith.constant 0 : index
    %70 = vector.load %arg6[%c128, %c0_31] : memref<512x64xf32, #tpu.memory_space<vmem>>, vector<64x64xf32>
    %c9 = arith.constant 9 : index
    %c0_32 = arith.constant 0 : index
    %71 = vector.load %arg7[%c9, %c0_32] : memref<16x320xf32, #tpu.memory_space<vmem>>, vector<1x64xf32>
    %cst_33 = arith.constant dense<0.000000e+00> : vector<8x64xf32>
    %72 = tpu.matmul %28, %70, %cst_33 {dimension_numbers = #tpu.dot_dimension_numbers<[1], [0], [0], [1], [0, 0, 1, 1], [], []>} : vector<8x64xf32>, vector<64x64xf32>, vector<8x64xf32> -> vector<8x64xf32>
    %73 = vector.broadcast %71 : vector<1x64xf32> to vector<8x64xf32>
    %74 = arith.addf %72, %73 : vector<8x64xf32>
    %75 = vector.shape_cast %74 : vector<8x64xf32> to vector<2x4x64xf32>
    %cst_34 = arith.constant 0.000000e+00 : f32
    %76 = vector.broadcast %cst_34 : f32 to vector<2x4x64xf32>
    %77 = vector.shape_cast %36 : vector<1x64xf32> to vector<1x1x64xf32>
    %78 = vector.broadcast %77 : vector<1x1x64xf32> to vector<2x4x64xf32>
    %79 = arith.mulf %69, %78 : vector<2x4x64xf32>
    %80 = vector.shape_cast %36 : vector<1x64xf32> to vector<1x1x64xf32>
    %81 = vector.broadcast %80 : vector<1x1x64xf32> to vector<2x4x64xf32>
    %82 = arith.mulf %75, %81 : vector<2x4x64xf32>
    "tpu.trace_start"() <{level = 10 : i32, message = "bqd,bkd->bqk"}> : () -> ()
    %cst_35 = arith.constant dense<0.000000e+00> : vector<2x4x4xf32>
    %83 = tpu.matmul %63, %79, %cst_35 {dimension_numbers = #tpu.dot_dimension_numbers<[2], [2], [1], [1], [0, 0, 0, 1, 1, 1], [0], [0]>} : vector<2x4x64xf32>, vector<2x4x64xf32>, vector<2x4x4xf32> -> vector<2x4x4xf32>
    "tpu.trace_stop"() : () -> ()
    %cst_36 = arith.constant 2.500000e-01 : f32
    %84 = vector.broadcast %cst_36 : f32 to vector<2x4x4xf32>
    %85 = arith.mulf %83, %84 : vector<2x4x4xf32>
    %cst_37 = arith.constant dense<0xFF800000> : vector<2x4xf32>
    %86 = vector.multi_reduction <maximumf>, %85, %cst_37 [2] : vector<2x4x4xf32> to vector<2x4xf32>
    %87 = vector.shape_cast %86 : vector<2x4xf32> to vector<2x4x1xf32>
    %88 = vector.broadcast %87 : vector<2x4x1xf32> to vector<2x4x4xf32>
    %89 = arith.subf %85, %88 : vector<2x4x4xf32>
    %90 = math.exp %89 : vector<2x4x4xf32>
    %cst_38 = arith.constant dense<0.000000e+00> : vector<2x4xf32>
    %91 = vector.multi_reduction <add>, %90, %cst_38 [2] : vector<2x4x4xf32> to vector<2x4xf32>
    %92 = vector.shape_cast %91 : vector<2x4xf32> to vector<2x4x1xf32>
    %93 = vector.broadcast %92 : vector<2x4x1xf32> to vector<2x4x4xf32>
    %94 = arith.divf %90, %93 : vector<2x4x4xf32>
    "tpu.trace_start"() <{level = 10 : i32, message = "bqk,bkd->bqd"}> : () -> ()
    %cst_39 = arith.constant dense<0.000000e+00> : vector<2x4x64xf32>
    %95 = tpu.matmul %94, %82, %cst_39 {dimension_numbers = #tpu.dot_dimension_numbers<[2], [1], [1], [2], [0, 0, 0, 1, 1, 2], [0], [0]>} : vector<2x4x4xf32>, vector<2x4x64xf32>, vector<2x4x64xf32> -> vector<2x4x64xf32>
    "tpu.trace_stop"() : () -> ()
    %96 = arith.addf %76, %95 : vector<2x4x64xf32>
    %97 = vector.shape_cast %43 : vector<1x64xf32> to vector<1x1x64xf32>
    %98 = vector.broadcast %97 : vector<1x1x64xf32> to vector<2x4x64xf32>
    %99 = arith.mulf %69, %98 : vector<2x4x64xf32>
    %100 = vector.shape_cast %43 : vector<1x64xf32> to vector<1x1x64xf32>
    %101 = vector.broadcast %100 : vector<1x1x64xf32> to vector<2x4x64xf32>
    %102 = arith.mulf %75, %101 : vector<2x4x64xf32>
    "tpu.trace_start"() <{level = 10 : i32, message = "bqd,bkd->bqk"}> : () -> ()
    %cst_40 = arith.constant dense<0.000000e+00> : vector<2x4x4xf32>
    %103 = tpu.matmul %63, %99, %cst_40 {dimension_numbers = #tpu.dot_dimension_numbers<[2], [2], [1], [1], [0, 0, 0, 1, 1, 1], [0], [0]>} : vector<2x4x64xf32>, vector<2x4x64xf32>, vector<2x4x4xf32> -> vector<2x4x4xf32>
    "tpu.trace_stop"() : () -> ()
    %cst_41 = arith.constant 2.500000e-01 : f32
    %104 = vector.broadcast %cst_41 : f32 to vector<2x4x4xf32>
    %105 = arith.mulf %103, %104 : vector<2x4x4xf32>
    %cst_42 = arith.constant dense<0xFF800000> : vector<2x4xf32>
    %106 = vector.multi_reduction <maximumf>, %105, %cst_42 [2] : vector<2x4x4xf32> to vector<2x4xf32>
    %107 = vector.shape_cast %106 : vector<2x4xf32> to vector<2x4x1xf32>
    %108 = vector.broadcast %107 : vector<2x4x1xf32> to vector<2x4x4xf32>
    %109 = arith.subf %105, %108 : vector<2x4x4xf32>
    %110 = math.exp %109 : vector<2x4x4xf32>
    %cst_43 = arith.constant dense<0.000000e+00> : vector<2x4xf32>
    %111 = vector.multi_reduction <add>, %110, %cst_43 [2] : vector<2x4x4xf32> to vector<2x4xf32>
    %112 = vector.shape_cast %111 : vector<2x4xf32> to vector<2x4x1xf32>
    %113 = vector.broadcast %112 : vector<2x4x1xf32> to vector<2x4x4xf32>
    %114 = arith.divf %110, %113 : vector<2x4x4xf32>
    "tpu.trace_start"() <{level = 10 : i32, message = "bqk,bkd->bqd"}> : () -> ()
    %cst_44 = arith.constant dense<0.000000e+00> : vector<2x4x64xf32>
    %115 = tpu.matmul %114, %102, %cst_44 {dimension_numbers = #tpu.dot_dimension_numbers<[2], [1], [1], [2], [0, 0, 0, 1, 1, 2], [0], [0]>} : vector<2x4x4xf32>, vector<2x4x64xf32>, vector<2x4x64xf32> -> vector<2x4x64xf32>
    "tpu.trace_stop"() : () -> ()
    %116 = arith.addf %96, %115 : vector<2x4x64xf32>
    %117 = vector.shape_cast %50 : vector<1x64xf32> to vector<1x1x64xf32>
    %118 = vector.broadcast %117 : vector<1x1x64xf32> to vector<2x4x64xf32>
    %119 = arith.mulf %69, %118 : vector<2x4x64xf32>
    %120 = vector.shape_cast %50 : vector<1x64xf32> to vector<1x1x64xf32>
    %121 = vector.broadcast %120 : vector<1x1x64xf32> to vector<2x4x64xf32>
    %122 = arith.mulf %75, %121 : vector<2x4x64xf32>
    "tpu.trace_start"() <{level = 10 : i32, message = "bqd,bkd->bqk"}> : () -> ()
    %cst_45 = arith.constant dense<0.000000e+00> : vector<2x4x4xf32>
    %123 = tpu.matmul %63, %119, %cst_45 {dimension_numbers = #tpu.dot_dimension_numbers<[2], [2], [1], [1], [0, 0, 0, 1, 1, 1], [0], [0]>} : vector<2x4x64xf32>, vector<2x4x64xf32>, vector<2x4x4xf32> -> vector<2x4x4xf32>
    "tpu.trace_stop"() : () -> ()
    %cst_46 = arith.constant 2.500000e-01 : f32
    %124 = vector.broadcast %cst_46 : f32 to vector<2x4x4xf32>
    %125 = arith.mulf %123, %124 : vector<2x4x4xf32>
    %cst_47 = arith.constant dense<0xFF800000> : vector<2x4xf32>
    %126 = vector.multi_reduction <maximumf>, %125, %cst_47 [2] : vector<2x4x4xf32> to vector<2x4xf32>
    %127 = vector.shape_cast %126 : vector<2x4xf32> to vector<2x4x1xf32>
    %128 = vector.broadcast %127 : vector<2x4x1xf32> to vector<2x4x4xf32>
    %129 = arith.subf %125, %128 : vector<2x4x4xf32>
    %130 = math.exp %129 : vector<2x4x4xf32>
    %cst_48 = arith.constant dense<0.000000e+00> : vector<2x4xf32>
    %131 = vector.multi_reduction <add>, %130, %cst_48 [2] : vector<2x4x4xf32> to vector<2x4xf32>
    %132 = vector.shape_cast %131 : vector<2x4xf32> to vector<2x4x1xf32>
    %133 = vector.broadcast %132 : vector<2x4x1xf32> to vector<2x4x4xf32>
    %134 = arith.divf %130, %133 : vector<2x4x4xf32>
    "tpu.trace_start"() <{level = 10 : i32, message = "bqk,bkd->bqd"}> : () -> ()
    %cst_49 = arith.constant dense<0.000000e+00> : vector<2x4x64xf32>
    %135 = tpu.matmul %134, %122, %cst_49 {dimension_numbers = #tpu.dot_dimension_numbers<[2], [1], [1], [2], [0, 0, 0, 1, 1, 2], [0], [0]>} : vector<2x4x4xf32>, vector<2x4x64xf32>, vector<2x4x64xf32> -> vector<2x4x64xf32>
    "tpu.trace_stop"() : () -> ()
    %136 = arith.addf %116, %135 : vector<2x4x64xf32>
    %137 = vector.shape_cast %57 : vector<1x64xf32> to vector<1x1x64xf32>
    %138 = vector.broadcast %137 : vector<1x1x64xf32> to vector<2x4x64xf32>
    %139 = arith.mulf %69, %138 : vector<2x4x64xf32>
    %140 = vector.shape_cast %57 : vector<1x64xf32> to vector<1x1x64xf32>
    %141 = vector.broadcast %140 : vector<1x1x64xf32> to vector<2x4x64xf32>
    %142 = arith.mulf %75, %141 : vector<2x4x64xf32>
    "tpu.trace_start"() <{level = 10 : i32, message = "bqd,bkd->bqk"}> : () -> ()
    %cst_50 = arith.constant dense<0.000000e+00> : vector<2x4x4xf32>
    %143 = tpu.matmul %63, %139, %cst_50 {dimension_numbers = #tpu.dot_dimension_numbers<[2], [2], [1], [1], [0, 0, 0, 1, 1, 1], [0], [0]>} : vector<2x4x64xf32>, vector<2x4x64xf32>, vector<2x4x4xf32> -> vector<2x4x4xf32>
    "tpu.trace_stop"() : () -> ()
    %cst_51 = arith.constant 2.500000e-01 : f32
    %144 = vector.broadcast %cst_51 : f32 to vector<2x4x4xf32>
    %145 = arith.mulf %143, %144 : vector<2x4x4xf32>
    %cst_52 = arith.constant dense<0xFF800000> : vector<2x4xf32>
    %146 = vector.multi_reduction <maximumf>, %145, %cst_52 [2] : vector<2x4x4xf32> to vector<2x4xf32>
    %147 = vector.shape_cast %146 : vector<2x4xf32> to vector<2x4x1xf32>
    %148 = vector.broadcast %147 : vector<2x4x1xf32> to vector<2x4x4xf32>
    %149 = arith.subf %145, %148 : vector<2x4x4xf32>
    %150 = math.exp %149 : vector<2x4x4xf32>
    %cst_53 = arith.constant dense<0.000000e+00> : vector<2x4xf32>
    %151 = vector.multi_reduction <add>, %150, %cst_53 [2] : vector<2x4x4xf32> to vector<2x4xf32>
    %152 = vector.shape_cast %151 : vector<2x4xf32> to vector<2x4x1xf32>
    %153 = vector.broadcast %152 : vector<2x4x1xf32> to vector<2x4x4xf32>
    %154 = arith.divf %150, %153 : vector<2x4x4xf32>
    "tpu.trace_start"() <{level = 10 : i32, message = "bqk,bkd->bqd"}> : () -> ()
    %cst_54 = arith.constant dense<0.000000e+00> : vector<2x4x64xf32>
    %155 = tpu.matmul %154, %142, %cst_54 {dimension_numbers = #tpu.dot_dimension_numbers<[2], [1], [1], [2], [0, 0, 0, 1, 1, 2], [0], [0]>} : vector<2x4x4xf32>, vector<2x4x64xf32>, vector<2x4x64xf32> -> vector<2x4x64xf32>
    "tpu.trace_stop"() : () -> ()
    %156 = arith.addf %136, %155 : vector<2x4x64xf32>
    %c192 = arith.constant 192 : index
    %c0_55 = arith.constant 0 : index
    %157 = vector.load %arg6[%c192, %c0_55] : memref<512x64xf32, #tpu.memory_space<vmem>>, vector<64x64xf32>
    %c10 = arith.constant 10 : index
    %c0_56 = arith.constant 0 : index
    %158 = vector.load %arg7[%c10, %c0_56] : memref<16x320xf32, #tpu.memory_space<vmem>>, vector<1x64xf32>
    %159 = vector.shape_cast %156 : vector<2x4x64xf32> to vector<8x64xf32>
    %cst_57 = arith.constant dense<0.000000e+00> : vector<8x64xf32>
    %160 = tpu.matmul %159, %157, %cst_57 {dimension_numbers = #tpu.dot_dimension_numbers<[1], [0], [0], [1], [0, 0, 1, 1], [], []>} : vector<8x64xf32>, vector<64x64xf32>, vector<8x64xf32> -> vector<8x64xf32>
    %161 = vector.broadcast %158 : vector<1x64xf32> to vector<8x64xf32>
    %162 = arith.addf %160, %161 : vector<8x64xf32>
    %c256 = arith.constant 256 : index
    %c0_58 = arith.constant 0 : index
    %163 = vector.load %arg6[%c256, %c0_58] : memref<512x64xf32, #tpu.memory_space<vmem>>, vector<64x64xf32>
    %c11 = arith.constant 11 : index
    %c0_59 = arith.constant 0 : index
    %164 = vector.load %arg7[%c11, %c0_59] : memref<16x320xf32, #tpu.memory_space<vmem>>, vector<1x64xf32>
    %cst_60 = arith.constant dense<0.000000e+00> : vector<8x64xf32>
    %165 = tpu.matmul %162, %163, %cst_60 {dimension_numbers = #tpu.dot_dimension_numbers<[1], [0], [0], [1], [0, 0, 1, 1], [], []>} : vector<8x64xf32>, vector<64x64xf32>, vector<8x64xf32> -> vector<8x64xf32>
    %166 = vector.broadcast %164 : vector<1x64xf32> to vector<8x64xf32>
    %167 = arith.addf %165, %166 : vector<8x64xf32>
    %168 = vector.shape_cast %167 : vector<8x64xf32> to vector<2x4x64xf32>
    %c320 = arith.constant 320 : index
    %c0_61 = arith.constant 0 : index
    %169 = vector.load %arg6[%c320, %c0_61] : memref<512x64xf32, #tpu.memory_space<vmem>>, vector<64x64xf32>
    %c12 = arith.constant 12 : index
    %c0_62 = arith.constant 0 : index
    %170 = vector.load %arg7[%c12, %c0_62] : memref<16x320xf32, #tpu.memory_space<vmem>>, vector<1x64xf32>
    %cst_63 = arith.constant dense<0.000000e+00> : vector<8x64xf32>
    %171 = tpu.matmul %162, %169, %cst_63 {dimension_numbers = #tpu.dot_dimension_numbers<[1], [0], [0], [1], [0, 0, 1, 1], [], []>} : vector<8x64xf32>, vector<64x64xf32>, vector<8x64xf32> -> vector<8x64xf32>
    %172 = vector.broadcast %170 : vector<1x64xf32> to vector<8x64xf32>
    %173 = arith.addf %171, %172 : vector<8x64xf32>
    %174 = vector.shape_cast %173 : vector<8x64xf32> to vector<2x4x64xf32>
    %c384 = arith.constant 384 : index
    %c0_64 = arith.constant 0 : index
    %175 = vector.load %arg6[%c384, %c0_64] : memref<512x64xf32, #tpu.memory_space<vmem>>, vector<64x64xf32>
    %c13 = arith.constant 13 : index
    %c0_65 = arith.constant 0 : index
    %176 = vector.load %arg7[%c13, %c0_65] : memref<16x320xf32, #tpu.memory_space<vmem>>, vector<1x64xf32>
    %cst_66 = arith.constant dense<0.000000e+00> : vector<8x64xf32>
    %177 = tpu.matmul %162, %175, %cst_66 {dimension_numbers = #tpu.dot_dimension_numbers<[1], [0], [0], [1], [0, 0, 1, 1], [], []>} : vector<8x64xf32>, vector<64x64xf32>, vector<8x64xf32> -> vector<8x64xf32>
    %178 = vector.broadcast %176 : vector<1x64xf32> to vector<8x64xf32>
    %179 = arith.addf %177, %178 : vector<8x64xf32>
    %180 = vector.shape_cast %179 : vector<8x64xf32> to vector<2x4x64xf32>
    %cst_67 = arith.constant 0.000000e+00 : f32
    %181 = vector.broadcast %cst_67 : f32 to vector<2x4x64xf32>
    %182 = vector.shape_cast %36 : vector<1x64xf32> to vector<1x1x64xf32>
    %183 = vector.broadcast %182 : vector<1x1x64xf32> to vector<2x4x64xf32>
    %184 = arith.mulf %174, %183 : vector<2x4x64xf32>
    %185 = vector.shape_cast %36 : vector<1x64xf32> to vector<1x1x64xf32>
    %186 = vector.broadcast %185 : vector<1x1x64xf32> to vector<2x4x64xf32>
    %187 = arith.mulf %180, %186 : vector<2x4x64xf32>
    "tpu.trace_start"() <{level = 10 : i32, message = "bqd,bkd->bqk"}> : () -> ()
    %cst_68 = arith.constant dense<0.000000e+00> : vector<2x4x4xf32>
    %188 = tpu.matmul %168, %184, %cst_68 {dimension_numbers = #tpu.dot_dimension_numbers<[2], [2], [1], [1], [0, 0, 0, 1, 1, 1], [0], [0]>} : vector<2x4x64xf32>, vector<2x4x64xf32>, vector<2x4x4xf32> -> vector<2x4x4xf32>
    "tpu.trace_stop"() : () -> ()
    %cst_69 = arith.constant 2.500000e-01 : f32
    %189 = vector.broadcast %cst_69 : f32 to vector<2x4x4xf32>
    %190 = arith.mulf %188, %189 : vector<2x4x4xf32>
    %cst_70 = arith.constant dense<0xFF800000> : vector<2x4xf32>
    %191 = vector.multi_reduction <maximumf>, %190, %cst_70 [2] : vector<2x4x4xf32> to vector<2x4xf32>
    %192 = vector.shape_cast %191 : vector<2x4xf32> to vector<2x4x1xf32>
    %193 = vector.broadcast %192 : vector<2x4x1xf32> to vector<2x4x4xf32>
    %194 = arith.subf %190, %193 : vector<2x4x4xf32>
    %195 = math.exp %194 : vector<2x4x4xf32>
    %cst_71 = arith.constant dense<0.000000e+00> : vector<2x4xf32>
    %196 = vector.multi_reduction <add>, %195, %cst_71 [2] : vector<2x4x4xf32> to vector<2x4xf32>
    %197 = vector.shape_cast %196 : vector<2x4xf32> to vector<2x4x1xf32>
    %198 = vector.broadcast %197 : vector<2x4x1xf32> to vector<2x4x4xf32>
    %199 = arith.divf %195, %198 : vector<2x4x4xf32>
    "tpu.trace_start"() <{level = 10 : i32, message = "bqk,bkd->bqd"}> : () -> ()
    %cst_72 = arith.constant dense<0.000000e+00> : vector<2x4x64xf32>
    %200 = tpu.matmul %199, %187, %cst_72 {dimension_numbers = #tpu.dot_dimension_numbers<[2], [1], [1], [2], [0, 0, 0, 1, 1, 2], [0], [0]>} : vector<2x4x4xf32>, vector<2x4x64xf32>, vector<2x4x64xf32> -> vector<2x4x64xf32>
    "tpu.trace_stop"() : () -> ()
    %201 = arith.addf %181, %200 : vector<2x4x64xf32>
    %202 = vector.shape_cast %43 : vector<1x64xf32> to vector<1x1x64xf32>
    %203 = vector.broadcast %202 : vector<1x1x64xf32> to vector<2x4x64xf32>
    %204 = arith.mulf %174, %203 : vector<2x4x64xf32>
    %205 = vector.shape_cast %43 : vector<1x64xf32> to vector<1x1x64xf32>
    %206 = vector.broadcast %205 : vector<1x1x64xf32> to vector<2x4x64xf32>
    %207 = arith.mulf %180, %206 : vector<2x4x64xf32>
    "tpu.trace_start"() <{level = 10 : i32, message = "bqd,bkd->bqk"}> : () -> ()
    %cst_73 = arith.constant dense<0.000000e+00> : vector<2x4x4xf32>
    %208 = tpu.matmul %168, %204, %cst_73 {dimension_numbers = #tpu.dot_dimension_numbers<[2], [2], [1], [1], [0, 0, 0, 1, 1, 1], [0], [0]>} : vector<2x4x64xf32>, vector<2x4x64xf32>, vector<2x4x4xf32> -> vector<2x4x4xf32>
    "tpu.trace_stop"() : () -> ()
    %cst_74 = arith.constant 2.500000e-01 : f32
    %209 = vector.broadcast %cst_74 : f32 to vector<2x4x4xf32>
    %210 = arith.mulf %208, %209 : vector<2x4x4xf32>
    %cst_75 = arith.constant dense<0xFF800000> : vector<2x4xf32>
    %211 = vector.multi_reduction <maximumf>, %210, %cst_75 [2] : vector<2x4x4xf32> to vector<2x4xf32>
    %212 = vector.shape_cast %211 : vector<2x4xf32> to vector<2x4x1xf32>
    %213 = vector.broadcast %212 : vector<2x4x1xf32> to vector<2x4x4xf32>
    %214 = arith.subf %210, %213 : vector<2x4x4xf32>
    %215 = math.exp %214 : vector<2x4x4xf32>
    %cst_76 = arith.constant dense<0.000000e+00> : vector<2x4xf32>
    %216 = vector.multi_reduction <add>, %215, %cst_76 [2] : vector<2x4x4xf32> to vector<2x4xf32>
    %217 = vector.shape_cast %216 : vector<2x4xf32> to vector<2x4x1xf32>
    %218 = vector.broadcast %217 : vector<2x4x1xf32> to vector<2x4x4xf32>
    %219 = arith.divf %215, %218 : vector<2x4x4xf32>
    "tpu.trace_start"() <{level = 10 : i32, message = "bqk,bkd->bqd"}> : () -> ()
    %cst_77 = arith.constant dense<0.000000e+00> : vector<2x4x64xf32>
    %220 = tpu.matmul %219, %207, %cst_77 {dimension_numbers = #tpu.dot_dimension_numbers<[2], [1], [1], [2], [0, 0, 0, 1, 1, 2], [0], [0]>} : vector<2x4x4xf32>, vector<2x4x64xf32>, vector<2x4x64xf32> -> vector<2x4x64xf32>
    "tpu.trace_stop"() : () -> ()
    %221 = arith.addf %201, %220 : vector<2x4x64xf32>
    %222 = vector.shape_cast %50 : vector<1x64xf32> to vector<1x1x64xf32>
    %223 = vector.broadcast %222 : vector<1x1x64xf32> to vector<2x4x64xf32>
    %224 = arith.mulf %174, %223 : vector<2x4x64xf32>
    %225 = vector.shape_cast %50 : vector<1x64xf32> to vector<1x1x64xf32>
    %226 = vector.broadcast %225 : vector<1x1x64xf32> to vector<2x4x64xf32>
    %227 = arith.mulf %180, %226 : vector<2x4x64xf32>
    "tpu.trace_start"() <{level = 10 : i32, message = "bqd,bkd->bqk"}> : () -> ()
    %cst_78 = arith.constant dense<0.000000e+00> : vector<2x4x4xf32>
    %228 = tpu.matmul %168, %224, %cst_78 {dimension_numbers = #tpu.dot_dimension_numbers<[2], [2], [1], [1], [0, 0, 0, 1, 1, 1], [0], [0]>} : vector<2x4x64xf32>, vector<2x4x64xf32>, vector<2x4x4xf32> -> vector<2x4x4xf32>
    "tpu.trace_stop"() : () -> ()
    %cst_79 = arith.constant 2.500000e-01 : f32
    %229 = vector.broadcast %cst_79 : f32 to vector<2x4x4xf32>
    %230 = arith.mulf %228, %229 : vector<2x4x4xf32>
    %cst_80 = arith.constant dense<0xFF800000> : vector<2x4xf32>
    %231 = vector.multi_reduction <maximumf>, %230, %cst_80 [2] : vector<2x4x4xf32> to vector<2x4xf32>
    %232 = vector.shape_cast %231 : vector<2x4xf32> to vector<2x4x1xf32>
    %233 = vector.broadcast %232 : vector<2x4x1xf32> to vector<2x4x4xf32>
    %234 = arith.subf %230, %233 : vector<2x4x4xf32>
    %235 = math.exp %234 : vector<2x4x4xf32>
    %cst_81 = arith.constant dense<0.000000e+00> : vector<2x4xf32>
    %236 = vector.multi_reduction <add>, %235, %cst_81 [2] : vector<2x4x4xf32> to vector<2x4xf32>
    %237 = vector.shape_cast %236 : vector<2x4xf32> to vector<2x4x1xf32>
    %238 = vector.broadcast %237 : vector<2x4x1xf32> to vector<2x4x4xf32>
    %239 = arith.divf %235, %238 : vector<2x4x4xf32>
    "tpu.trace_start"() <{level = 10 : i32, message = "bqk,bkd->bqd"}> : () -> ()
    %cst_82 = arith.constant dense<0.000000e+00> : vector<2x4x64xf32>
    %240 = tpu.matmul %239, %227, %cst_82 {dimension_numbers = #tpu.dot_dimension_numbers<[2], [1], [1], [2], [0, 0, 0, 1, 1, 2], [0], [0]>} : vector<2x4x4xf32>, vector<2x4x64xf32>, vector<2x4x64xf32> -> vector<2x4x64xf32>
    "tpu.trace_stop"() : () -> ()
    %241 = arith.addf %221, %240 : vector<2x4x64xf32>
    %242 = vector.shape_cast %57 : vector<1x64xf32> to vector<1x1x64xf32>
    %243 = vector.broadcast %242 : vector<1x1x64xf32> to vector<2x4x64xf32>
    %244 = arith.mulf %174, %243 : vector<2x4x64xf32>
    %245 = vector.shape_cast %57 : vector<1x64xf32> to vector<1x1x64xf32>
    %246 = vector.broadcast %245 : vector<1x1x64xf32> to vector<2x4x64xf32>
    %247 = arith.mulf %180, %246 : vector<2x4x64xf32>
    "tpu.trace_start"() <{level = 10 : i32, message = "bqd,bkd->bqk"}> : () -> ()
    %cst_83 = arith.constant dense<0.000000e+00> : vector<2x4x4xf32>
    %248 = tpu.matmul %168, %244, %cst_83 {dimension_numbers = #tpu.dot_dimension_numbers<[2], [2], [1], [1], [0, 0, 0, 1, 1, 1], [0], [0]>} : vector<2x4x64xf32>, vector<2x4x64xf32>, vector<2x4x4xf32> -> vector<2x4x4xf32>
    "tpu.trace_stop"() : () -> ()
    %cst_84 = arith.constant 2.500000e-01 : f32
    %249 = vector.broadcast %cst_84 : f32 to vector<2x4x4xf32>
    %250 = arith.mulf %248, %249 : vector<2x4x4xf32>
    %cst_85 = arith.constant dense<0xFF800000> : vector<2x4xf32>
    %251 = vector.multi_reduction <maximumf>, %250, %cst_85 [2] : vector<2x4x4xf32> to vector<2x4xf32>
    %252 = vector.shape_cast %251 : vector<2x4xf32> to vector<2x4x1xf32>
    %253 = vector.broadcast %252 : vector<2x4x1xf32> to vector<2x4x4xf32>
    %254 = arith.subf %250, %253 : vector<2x4x4xf32>
    %255 = math.exp %254 : vector<2x4x4xf32>
    %cst_86 = arith.constant dense<0.000000e+00> : vector<2x4xf32>
    %256 = vector.multi_reduction <add>, %255, %cst_86 [2] : vector<2x4x4xf32> to vector<2x4xf32>
    %257 = vector.shape_cast %256 : vector<2x4xf32> to vector<2x4x1xf32>
    %258 = vector.broadcast %257 : vector<2x4x1xf32> to vector<2x4x4xf32>
    %259 = arith.divf %255, %258 : vector<2x4x4xf32>
    "tpu.trace_start"() <{level = 10 : i32, message = "bqk,bkd->bqd"}> : () -> ()
    %cst_87 = arith.constant dense<0.000000e+00> : vector<2x4x64xf32>
    %260 = tpu.matmul %259, %247, %cst_87 {dimension_numbers = #tpu.dot_dimension_numbers<[2], [1], [1], [2], [0, 0, 0, 1, 1, 2], [0], [0]>} : vector<2x4x4xf32>, vector<2x4x64xf32>, vector<2x4x64xf32> -> vector<2x4x64xf32>
    "tpu.trace_stop"() : () -> ()
    %261 = arith.addf %241, %260 : vector<2x4x64xf32>
    %c448 = arith.constant 448 : index
    %c0_88 = arith.constant 0 : index
    %262 = vector.load %arg6[%c448, %c0_88] : memref<512x64xf32, #tpu.memory_space<vmem>>, vector<64x64xf32>
    %c14 = arith.constant 14 : index
    %c0_89 = arith.constant 0 : index
    %263 = vector.load %arg7[%c14, %c0_89] : memref<16x320xf32, #tpu.memory_space<vmem>>, vector<1x64xf32>
    %264 = vector.shape_cast %261 : vector<2x4x64xf32> to vector<8x64xf32>
    %cst_90 = arith.constant dense<0.000000e+00> : vector<8x64xf32>
    %265 = tpu.matmul %264, %262, %cst_90 {dimension_numbers = #tpu.dot_dimension_numbers<[1], [0], [0], [1], [0, 0, 1, 1], [], []>} : vector<8x64xf32>, vector<64x64xf32>, vector<8x64xf32> -> vector<8x64xf32>
    %266 = vector.broadcast %263 : vector<1x64xf32> to vector<8x64xf32>
    %267 = arith.addf %265, %266 : vector<8x64xf32>
    %c0_91 = arith.constant 0 : index
    %c0_92 = arith.constant 0 : index
    %268 = vector.load %arg5[%c0_91, %c0_92] : memref<64x32xf32, #tpu.memory_space<vmem>>, vector<64x32xf32>
    %cst_93 = arith.constant dense<0.000000e+00> : vector<8x32xf32>
    %269 = tpu.matmul %267, %268, %cst_93 {dimension_numbers = #tpu.dot_dimension_numbers<[1], [0], [0], [1], [0, 0, 1, 1], [], []>} : vector<8x64xf32>, vector<64x32xf32>, vector<8x32xf32> -> vector<8x32xf32>
    %c4 = arith.constant 4 : index
    %c0_94 = arith.constant 0 : index
    %270 = vector.load %arg7[%c4, %c0_94] : memref<16x320xf32, #tpu.memory_space<vmem>>, vector<1x32xf32>
    %271 = vector.broadcast %270 : vector<1x32xf32> to vector<8x32xf32>
    %272 = arith.addf %269, %271 : vector<8x32xf32>
    %cst_95 = arith.constant 0.000000e+00 : f32
    %273 = vector.broadcast %cst_95 : f32 to vector<8x32xf32>
    %274 = arith.maximumf %272, %273 : vector<8x32xf32>
    %c5 = arith.constant 5 : index
    %c0_96 = arith.constant 0 : index
    %275 = vector.load %arg7[%c5, %c0_96] : memref<16x320xf32, #tpu.memory_space<vmem>>, vector<1x32xf32>
    %276 = vector.broadcast %275 : vector<1x32xf32> to vector<8x32xf32>
    %277 = arith.mulf %274, %276 : vector<8x32xf32>
    %cst_97 = arith.constant dense<0.000000e+00> : vector<8xf32>
    %278 = vector.multi_reduction <add>, %277, %cst_97 [1] : vector<8x32xf32> to vector<8xf32>
    %279 = vector.shape_cast %278 : vector<8xf32> to vector<8x1xf32>
    %c6 = arith.constant 6 : index
    %c0_98 = arith.constant 0 : index
    %280 = vector.load %arg7[%c6, %c0_98] : memref<16x320xf32, #tpu.memory_space<vmem>>, vector<1x1xf32>
    %281 = vector.broadcast %280 : vector<1x1xf32> to vector<8x1xf32>
    %282 = arith.addf %279, %281 : vector<8x1xf32>
    %cst_99 = arith.constant 0.000000e+00 : f32
    %283 = vector.broadcast %cst_99 : f32 to vector<8x1xf32>
    %284 = arith.subf %283, %282 : vector<8x1xf32>
    %285 = math.exp %284 : vector<8x1xf32>
    %cst_100 = arith.constant 1.000000e+00 : f32
    %286 = vector.broadcast %cst_100 : f32 to vector<8x1xf32>
    %287 = arith.addf %286, %285 : vector<8x1xf32>
    %288 = tpu.reciprocal %287 {approx = true} : vector<8x1xf32> -> vector<8x1xf32>
    %c0_101 = arith.constant 0 : index
    %c0_102 = arith.constant 0 : index
    %289 = vector.load %arg8[%c0_101, %c0_102] : memref<8x1xf32, #tpu.memory_space<vmem>>, vector<8x1xf32>
    tpu.vector_store %arg8[%c0_101, %c0_102], %288 {strides = array<i32>} : memref<8x1xf32, #tpu.memory_space<vmem>>, vector<8x1xf32>,
    return
  }
}

</mosaic_0001>

<bundles_post_ra>
// kernel: tpu_custom_call.1
= control target key start
LH: loop header
LB: loop body
LE: loop exit
PB: predicated region body
PF: predicated region fallthrough
CT: control target
= control target key end

     0   :  { %13 = vsyncpa [#allocation3], 0  ;;  %s6236_s0 = inlined_call_operand.vmem [shape: f32[8,20], index: 0, kind: input, shape index: {}]   ;;  %s6237_s1 = inlined_call_operand.hbm [shape: f32[20,160], index: 1, kind: input, shape index: {}]   ;;  %s6238_s2 = inlined_call_operand.vmem [shape: f32[160,320], index: 2, kind: input, shape index: {}]   ;;  %s6239_s3 = inlined_call_operand.vmem [shape: f32[320,128], index: 3, kind: input, shape index: {}]   ;;  %s6240_s4 = inlined_call_operand.vmem [shape: f32[128,64], index: 4, kind: input, shape index: {}]   ;;  %s6241_s5 = inlined_call_operand.vmem [shape: f32[64,32], index: 5, kind: input, shape index: {}]   ;;  %s6242_s6 = inlined_call_operand.vmem [shape: f32[512,64], index: 6, kind: input, shape index: {}]   ;;  %s6243_s7 = inlined_call_operand.hbm [shape: f32[16,320], index: 7, kind: input, shape index: {}]   ;;  %s6244_s8 = inlined_call_operand.vmem [shape: f32[8,1], index: 8, kind: output, shape index: {}]  }
   0x1   :  { %14 = vsyncpa [#allocation5], 0  ;;  %s5148_s27 = smov [#allocation2]   ;;  %s5100_s9 = scalar_lea.hbm %s6237_s1, 768 }
   0x2   :  { %s22_s28 = sshll.u32 %s5148_s27, 4  ;;  %p5101_p0 = scmp.ne.s32.totalorder %s6237_s1, %s5100_s9  ;;  %s23_s28 = int_to_ptr.vmem [resolvable:$true] %s22_s28 }
   0x3   :  { %p5104_p1 = scmp.lt.u32.totalorder %s5100_s9, %s6237_s1 }
   0x5   :  { %p5106_p2 = pnand %p5104_p1, %p5101_p0 }
   0x7   :  { %5109 = shalt.err (!%p5106_p2)
}
   0x8   :  { %s5110_s14 = scalar_lea.vmem %s23_s28, 768  ;;  %p5115_p4 = scmp.lt.s32.totalorder %s23_s28, %s23_s28 }
   0x9   :  { %p5111_p3 = scmp.ne.s32.totalorder %s23_s28, %s5110_s14  ;;  %p5116_p5 = scmp.lt.s32.totalorder %s5110_s14, %s5110_s14 }
   0xb   :  { %p5117_p6 = por %p5116_p5, %p5115_p4 }
   0xd   :  { %p5118_p7 = pnand %p5117_p6, %p5111_p3 }
   0xf   :  { %5121 = shalt.err (!%p5118_p7)
}
  0x10   :  { %s5149_s15 = smov 256   ;;  %s5150_s16 = smov 16  }
  0x11   :  { %28 = dma.hbm_to_vmem [thread:$0]  %s6237_s1, 768, %s23_s28, [#allocation3], %s5149_s15, %s5149_s15, %s5150_s16  }
  0x12   :  { %s5151_s19 = smov [#allocation4]   ;;  %s5122_s23 = scalar_lea.hbm %s6243_s7, 768 }
  0x13   :  { %s44_s20 = sshll.u32 %s5151_s19, 4  ;;  %p5123_p8 = scmp.ne.s32.totalorder %s6243_s7, %s5122_s23  ;;  %s45_s20 = int_to_ptr.vmem [resolvable:$true] %s44_s20 }
  0x14   :  { %p5126_p9 = scmp.lt.u32.totalorder %s5122_s23, %s6243_s7 }
  0x16   :  { %p5128_p10 = pnand %p5126_p9, %p5123_p8 }
  0x18   :  { %5131 = shalt.err (!%p5128_p10)
}
  0x19   :  { %s5132_s29 = scalar_lea.vmem %s45_s20, 768  ;;  %p5137_p12 = scmp.lt.s32.totalorder %s45_s20, %s45_s20 }
  0x1a   :  { %p5133_p11 = scmp.ne.s32.totalorder %s45_s20, %s5132_s29  ;;  %p5138_p13 = scmp.lt.s32.totalorder %s5132_s29, %s5132_s29 }
  0x1c   :  { %p5139_p0 = por %p5138_p13, %p5137_p12 }
  0x1e   :  { %p5140_p1 = pnand %p5139_p0, %p5133_p11 }
  0x20   :  { %5143 = shalt.err (!%p5140_p1)
}
  0x21   :  { %s5152_s1 = smov 384   ;;  %s5153_s28 = smov 24  }
  0x22   :  { %50 = dma.hbm_to_vmem [thread:$0]  %s6243_s7, 768, %s45_s20, [#allocation5], %s5152_s1, %s5152_s1, %s5153_s28  }
  0x23   :  { %5144 = dma.done.wait [#allocation3], 768  }
  0x24   :  { %5145 = vsyncadd [#allocation3], 4294966528 }
  0x25   :  { %5146 = dma.done.wait [#allocation5], 768  }
  0x26   :  { %5147 = vsyncadd [#allocation5], 4294966528  ;;  %v5154_v0 = vmov 0.0   ;;  %v59_v1 = vld [vmem:[#allocation2 + $0x8] sm:$0xff]  ;;  %v61_v2 = vld [vmem:[#allocation2 + $0x18] sm:$0xff]  ;;  %vm80_vm0 = vcmask 1043456  }
  0x27   :  { %151 = vmatprep.mubr.f32.mxu0 %v5154_v0  ;;  %v58_v3 = vld [vmem:[#allocation2] sm:$0xff]  ;;  %v4749_v4 = vpack.c.bf16 %v61_v2, %v59_v1  ;;  %v60_v5 = vld [vmem:[#allocation2 + $0x10] sm:$0xff]  ;;  %v63_v7 = vld [vmem:[#allocation2 + $0x28] sm:$0xf]  ;;  %vm76_vm1 = vcmask 162816   ;;  %v5155_v34 = vmov 0.0|0.0  }
  0x28   :  { %v4751_v6 = vpack.c.bf16 %v60_v5, %v58_v3  ;;  %v161_v8 = vld [vmem:[%s6238_s2 + $0x8] sm:$0xff]  ;;  %v164_v9 = vld [vmem:[%s6238_s2 + $0x20] sm:$0xff]  ;;  %v163_v13 = vld [vmem:[%s6238_s2 + $0x18] sm:$0xff]  ;;  %vm238_vm2 = vcmask 261120   ;;  %vm5156_vm3 = vmmov 0   ;;  %vm427_vm4 = vcmask 523264  }
  0x29   :  { %4750 = vmatprep.subr.bf16.mxu0 %v4749_v4  ;;  %v62_v10 = vld [vmem:[#allocation2 + $0x20] sm:$0xf]  ;;  %v4753_v11 = vpack.c.bf16 %v164_v9, %v161_v8  ;;  %v162_v14 = vld [vmem:[%s6238_s2 + $0x10] sm:$0xff]  ;;  %v165_v16 = vld [vmem:[%s6238_s2 + $0x28] sm:$0xff]  ;;  %vm1086_vm9 = vcmask 27648   ;;  %vm1283_vm10 = vcmask 31744  }
  0x2a   :  { %v160_v12 = vld [vmem:[%s6238_s2] sm:$0xff]  ;;  %4752 = vmatpush1.bf16.msra.mxu0 %v4751_v6  ;;  %v167_v17 = vld [vmem:[%s6238_s2 + $0x38] sm:$0xff]  ;;  %v170_v18 = vld [vmem:[%s6238_s2 + $0x50] sm:$0xff]  ;;  %v4794_v23 = vpack.c.bf16 %v165_v16, %v162_v14 }
  0x2b   :  { %v4755_v15 = vpack.c.bf16 %v163_v13, %v160_v12  ;;  %4075 = vmatprep.subr.msk.mxu0 %vm80_vm0, %v63_v7  ;;  %v57_v19 = vld [vmem:[%s6236_s0] sm:$0xff]  ;;  %4754 = vmatprep.subr.bf16.mxu1 %v4753_v11  ;;  %v4757_v20 = vpack.c.bf16 %v170_v18, %v167_v17  ;;  %v166_v21 = vld [vmem:[%s6238_s2 + $0x30] sm:$0xff]  ;;  %v169_v22 = vld [vmem:[%s6238_s2 + $0x48] sm:$0xff] }
  0x2c   :  { %v4759_v24 = vpack.c.bf16 %v169_v22, %v166_v21  ;;  %v168_v25 = vld [vmem:[%s6238_s2 + $0x40] sm:$0xff]  ;;  %v173_v26 = vld [vmem:[%s6238_s2 + $0x68] sm:$0xff]  ;;  %v171_v28 = vld [vmem:[%s6238_s2 + $0x58] sm:$0xff] }
  0x2d   :  { %4756 = vmatpush1.bf16.msra.mxu1 %v4755_v15  ;;  %v176_v27 = vld [vmem:[%s6238_s2 + $0x80] sm:$0xff]  ;;  %v175_v31 = vld [vmem:[%s6238_s2 + $0x78] sm:$0xff]  ;;  %v182_v33 = vld [vmem:[%s6238_s2 + $0xb0] sm:$0xff]  ;;  %v4797_v35 = vpack.c.bf16 %v171_v28, %v168_v25 }
  0x2e   :  { %4758 = vmatprep.subr.bf16.mxu1 %v4757_v20  ;;  %v4761_v29 = vpack.c.bf16 %v176_v27, %v173_v26  ;;  %v172_v30 = vld [vmem:[%s6238_s2 + $0x60] sm:$0xff]  ;;  %4076 = vmatpush1.msk.msra.mxu0 %vm80_vm0, %v62_v10  ;;  %v179_v32 = vld [vmem:[%s6238_s2 + $0x98] sm:$0xff]  ;;  %v174_v37 = vld [vmem:[%s6238_s2 + $0x70] sm:$0xff] }
  0x2f   :  { %4077 = vmatmul.mubr.msk.f32.vlgmr.msra.gmra.mrb[0].mxu0 %vm76_vm1, %v57_v19  ;;  %4793 = vmatprep.subr.bf16.mxu0 %v5155_v34  ;;  %v4763_v36 = vpack.c.bf16 %v175_v31, %v172_v30  ;;  %v177_v38 = vld [vmem:[%s6238_s2 + $0x88] sm:$0xff]  ;;  %v4765_v39 = vpack.c.bf16 %v182_v33, %v179_v32  ;;  %v178_v40 = vld [vmem:[%s6238_s2 + $0x90] sm:$0xff]  ;;  %v188_v43 = vld [vmem:[%s6238_s2 + $0xe0] sm:$0xff] }
  0x30   :  { %4795 = vmatpush1.bf16.msra.mxu0 %v4794_v23  ;;  %v181_v41 = vld [vmem:[%s6238_s2 + $0xa8] sm:$0xff]  ;;  %v4800_v44 = vpack.c.bf16 %v177_v38, %v174_v37  ;;  %v180_v46 = vld [vmem:[%s6238_s2 + $0xa0] sm:$0xff]  ;;  %v183_v47 = vld [vmem:[%s6238_s2 + $0xb8] sm:$0xff] }
  0x31   :  { %4760 = vmatpush1.bf16.msra.mxu1 %v4759_v24  ;;  %4796 = vmatprep.subr.bf16.mxu0 %v5155_v34  ;;  %v185_v42 = vld [vmem:[%s6238_s2 + $0xc8] sm:$0xff]  ;;  %v4767_v45 = vpack.c.bf16 %v181_v41, %v178_v40  ;;  %v184_v49 = vld [vmem:[%s6238_s2 + $0xc0] sm:$0xff]  ;;  %v187_v50 = vld [vmem:[%s6238_s2 + $0xd8] sm:$0xff]  ;;  %v4803_v53 = vpack.c.bf16 %v183_v47, %v180_v46 }
  0x32   :  { %4762 = vmatprep.subr.bf16.mxu1 %v4761_v29  ;;  %v4769_v48 = vpack.c.bf16 %v188_v43, %v185_v42  ;;  %v191_v51 = vld [vmem:[%s6238_s2 + $0xf8] sm:$0xff]  ;;  %v194_v52 = vld [vmem:[%s6238_s2 + $0x110] sm:$0xff]  ;;  %v4771_v54 = vpack.c.bf16 %v187_v50, %v184_v49  ;;  %v189_v56 = vld [vmem:[%s6238_s2 + $0xe8] sm:$0xff]  ;;  %v66_v42 = vlaneseq }
  0x33   :  { %v186_v55 = vld [vmem:[%s6238_s2 + $0xd0] sm:$0xff]  ;;  %v4773_v57 = vpack.c.bf16 %v194_v52, %v191_v51  ;;  %v193_v59 = vld [vmem:[%s6238_s2 + $0x108] sm:$0xff]  ;;  %v200_v61 = vld [vmem:[%s6238_s2 + $0x140] sm:$0xff] }
  0x34   :  { %4798 = vmatpush1.bf16.msra.mxu0 %v4797_v35  ;;  %v190_v58 = vld [vmem:[%s6238_s2 + $0xf0] sm:$0xff]  ;;  %v197_v60 = vld [vmem:[%s6238_s2 + $0x128] sm:$0xff]  ;;  %v4806_v62 = vpack.c.bf16 %v189_v56, %v186_v55  ;;  %v192_v1 = vld [vmem:[%s6238_s2 + $0x100] sm:$0xff]  ;;  %v5430_v43 = vshrl.u32 %v66_v42, 7 }
  0x35   :  { %4764 = vmatpush1.bf16.msra.mxu1 %v4763_v36  ;;  %4799 = vmatprep.subr.bf16.mxu0 %v5155_v34  ;;  %v4775_v63 = vpack.c.bf16 %v193_v59, %v190_v58  ;;  %v195_v2 = vld [vmem:[%s6238_s2 + $0x118] sm:$0xff]  ;;  %v4777_v3 = vpack.c.bf16 %v200_v61, %v197_v60  ;;  %v196_v4 = vld [vmem:[%s6238_s2 + $0x120] sm:$0xff]  ;;  %v206_v7 = vld [vmem:[%s6238_s2 + $0x170] sm:$0xff] }
  0x36   :  { %4766 = vmatprep.subr.bf16.mxu1 %v4765_v39  ;;  %v199_v5 = vld [vmem:[%s6238_s2 + $0x138] sm:$0xff]  ;;  %v4809_v8 = vpack.c.bf16 %v195_v2, %v192_v1  ;;  %v198_v10 = vld [vmem:[%s6238_s2 + $0x130] sm:$0xff]  ;;  %v201_v11 = vld [vmem:[%s6238_s2 + $0x148] sm:$0xff]  ;;  %v72_v46 = vsub.s32 1, %v5430_v43 }
  0x37   :  { %v203_v6 = vld [vmem:[%s6238_s2 + $0x158] sm:$0xff]  ;;  %v4779_v9 = vpack.c.bf16 %v199_v5, %v196_v4  ;;  %v202_v13 = vld [vmem:[%s6238_s2 + $0x150] sm:$0xff]  ;;  %v205_v14 = vld [vmem:[%s6238_s2 + $0x168] sm:$0xff]  ;;  %v4812_v17 = vpack.c.bf16 %v201_v11, %v198_v10 }
  0x38   :  { %4801 = vmatpush1.bf16.msra.mxu0 %v4800_v44  ;;  %v4781_v12 = vpack.c.bf16 %v206_v7, %v203_v6  ;;  %v209_v15 = vld [vmem:[%s6238_s2 + $0x188] sm:$0xff]  ;;  %v212_v16 = vld [vmem:[%s6238_s2 + $0x1a0] sm:$0xff]  ;;  %v4783_v18 = vpack.c.bf16 %v205_v14, %v202_v13  ;;  %v207_v20 = vld [vmem:[%s6238_s2 + $0x178] sm:$0xff]  ;;  %v68_v44 = vsub.s32 0, %v5430_v43 }
  0x39   :  { %4768 = vmatpush1.bf16.msra.mxu1 %v4767_v45  ;;  %4802 = vmatprep.subr.bf16.mxu0 %v5155_v34  ;;  %v204_v19 = vld [vmem:[%s6238_s2 + $0x160] sm:$0xff]  ;;  %v4785_v21 = vpack.c.bf16 %v212_v16, %v209_v15  ;;  %v211_v24 = vld [vmem:[%s6238_s2 + $0x198] sm:$0xff]  ;;  %v210_v25 = vld [vmem:[%s6238_s2 + $0x190] sm:$0xff] }
  0x3a   :  { %4770 = vmatprep.subr.bf16.mxu1 %v4769_v48  ;;  %v4815_v22 = vpack.c.bf16 %v207_v20, %v204_v19  ;;  %v208_v23 = vld [vmem:[%s6238_s2 + $0x180] sm:$0xff]  ;;  %v213_v27 = vld [vmem:[%s6238_s2 + $0x1a8] sm:$0xff]  ;;  %v215_v29 = vld [vmem:[%s6238_s2 + $0x1b8] sm:$0xff] }
  0x3b   :  { %v4787_v26 = vpack.c.bf16 %v211_v24, %v208_v23  ;;  %v4818_v28 = vpack.c.bf16 %v213_v27, %v210_v25  ;;  %v218_v30 = vld [vmem:[%s6238_s2 + $0x1d0] sm:$0xff]  ;;  %v217_v33 = vld [vmem:[%s6238_s2 + $0x1c8] sm:$0xff]  ;;  %v216_v35 = vld [vmem:[%s6238_s2 + $0x1c0] sm:$0xff] }
  0x3c   :  { %4804 = vmatpush1.bf16.msra.mxu0 %v4803_v53  ;;  %v4789_v31 = vpack.c.bf16 %v218_v30, %v215_v29  ;;  %v214_v32 = vld [vmem:[%s6238_s2 + $0x1b0] sm:$0xff]  ;;  %v219_v37 = vld [vmem:[%s6238_s2 + $0x1d8] sm:$0xff]  ;;  %v402_v39 = vld [vmem:[%s6239_s3 + $0x80] sm:$0xff] }
  0x3d   :  { %4772 = vmatpush1.bf16.msra.mxu1 %v4771_v54  ;;  %4805 = vmatprep.subr.bf16.mxu0 %v5155_v34  ;;  %v4791_v36 = vpack.c.bf16 %v217_v33, %v214_v32  ;;  %v4821_v38 = vpack.c.bf16 %v219_v37, %v216_v35  ;;  %v403_v40 = vld [vmem:[%s6239_s3 + $0x88] sm:$0xff]  ;;  %v64_v45 = vld [vmem:[#allocation4] ss:$8 sm:$0x3]  ;;  %v386_v50 = vld [vmem:[%s6239_s3] sm:$0xff] }
  0x3e   :  { %4774 = vmatprep.subr.bf16.mxu1 %v4773_v57  ;;  %v4823_v41 = vpack.c.bf16 %v403_v40, %v402_v39  ;;  %v69_v47 = vrot.slane %v64_v45, %v68_v44  ;;  %v73_v48 = vrot.slane %v64_v45, %v72_v46  ;;  %v387_v53 = vld [vmem:[%s6239_s3 + $0x8] sm:$0xff]  ;;  %v418_v54 = vld [vmem:[%s6239_s3 + $0x100] sm:$0xff]  ;;  %v404_v57 = vld [vmem:[%s6239_s3 + $0x90] sm:$0xff] }
  0x3f   :  { %v419_v55 = vld [vmem:[%s6239_s3 + $0x108] sm:$0xff]  ;;  %v405_v58 = vld [vmem:[%s6239_s3 + $0x98] sm:$0xff]  ;;  %v4825_v60 = vpack.c.bf16 %v387_v53, %v386_v50  ;;  %v388_v61 = vld [vmem:[%s6239_s3 + $0x10] sm:$0xff] }
  0x40   :  { %4807 = vmatpush1.bf16.msra.mxu0 %v4806_v62  ;;  %v4856_v62 = vpack.c.bf16 %v419_v55, %v418_v54  ;;  %v4827_v1 = vpack.c.bf16 %v405_v58, %v404_v57  ;;  %v389_v2 = vld [vmem:[%s6239_s3 + $0x18] sm:$0xff]  ;;  %v406_v5 = vld [vmem:[%s6239_s3 + $0xa0] sm:$0xff]  ;;  %v407_v6 = vld [vmem:[%s6239_s3 + $0xa8] sm:$0xff]  ;;  %v233_v54 = vsub.s32 2, %v5430_v43 }
  0x41   :  { %4776 = vmatpush1.bf16.msra.mxu1 %v4775_v63  ;;  %4808 = vmatprep.subr.bf16.mxu0 %v5155_v34  ;;  %v421_v4 = vld [vmem:[%s6239_s3 + $0x118] sm:$0xff]  ;;  %v4829_v7 = vpack.c.bf16 %v389_v2, %v388_v61  ;;  %v4831_v10 = vpack.c.bf16 %v407_v6, %v406_v5  ;;  %v391_v11 = vld [vmem:[%s6239_s3 + $0x28] sm:$0xff]  ;;  %v408_v14 = vld [vmem:[%s6239_s3 + $0xb0] sm:$0xff] }
  0x42   :  { %4778 = vmatprep.subr.bf16.mxu1 %v4777_v3  ;;  %v420_v3 = vld [vmem:[%s6239_s3 + $0x110] sm:$0xff]  ;;  %v423_v13 = vld [vmem:[%s6239_s3 + $0x128] sm:$0xff]  ;;  %v409_v15 = vld [vmem:[%s6239_s3 + $0xb8] sm:$0xff] }
  0x43   :  { %v392_v19 = vld [vmem:[%s6239_s3 + $0x30] sm:$0xff]  ;;  %v393_v20 = vld [vmem:[%s6239_s3 + $0x38] sm:$0xff]  ;;  %v394_v25 = vld [vmem:[%s6239_s3 + $0x40] sm:$0xff] }
  0x44   :  { %4810 = vmatpush1.bf16.msra.mxu0 %v4809_v8  ;;  %v390_v8 = vld [vmem:[%s6239_s3 + $0x20] sm:$0xff]  ;;  %v4837_v23 = vpack.c.bf16 %v393_v20, %v392_v19  ;;  %v412_v27 = vld [vmem:[%s6239_s3 + $0xd0] sm:$0xff]  ;;  %v397_v32 = vld [vmem:[%s6239_s3 + $0x58] sm:$0xff] }
  0x45   :  { %4780 = vmatpush1.bf16.msra.mxu1 %v4779_v9  ;;  %4811 = vmatprep.subr.bf16.mxu0 %v5155_v34  ;;  %v4859_v9 = vpack.c.bf16 %v421_v4, %v420_v3  ;;  %v4833_v16 = vpack.c.bf16 %v391_v11, %v390_v8  ;;  %v414_v33 = vld [vmem:[%s6239_s3 + $0xe0] sm:$0xff]  ;;  %v415_v35 = vld [vmem:[%s6239_s3 + $0xe8] sm:$0xff]  ;;  %v425_v45 = vld [vmem:[%s6239_s3 + $0x138] sm:$0xff] }
  0x46   :  { %4782 = vmatprep.subr.bf16.mxu1 %v4781_v12  ;;  %v422_v12 = vld [vmem:[%s6239_s3 + $0x120] sm:$0xff]  ;;  %v4847_v37 = vpack.c.bf16 %v415_v35, %v414_v33  ;;  %v399_v39 = vld [vmem:[%s6239_s3 + $0x68] sm:$0xff]  ;;  %v574_v43 = vld [vmem:[%s6240_s4 + $0x10] sm:$0xff] }
  0x47   :  { %v221_v55 = vld [vmem:[#allocation4 + $0x1] ss:$8 sm:$0x7]  ;;  %v687_v35 = vld [vmem:[%s6242_s6 + $0x28] sm:$0xff] }
  0x48   :  { %4813 = vmatpush1.bf16.msra.mxu0 %v4812_v17  ;;  %v4862_v17 = vpack.c.bf16 %v423_v13, %v422_v12  ;;  %v234_v57 = vrot.slane %v221_v55, %v233_v54  ;;  %v230_v58 = vrot.slane %v221_v55, %v72_v46  ;;  %v575_v46 = vld [vmem:[%s6240_s4 + $0x18] sm:$0xff]  ;;  %v578_v12 = vld [vmem:[%s6240_s4 + $0x30] sm:$0xff]  ;;  %v686_v33 = vld [vmem:[%s6242_s6 + $0x20] sm:$0xff] }
  0x49   :  { %4784 = vmatpush1.bf16.msra.mxu1 %v4783_v18  ;;  %4814 = vmatprep.subr.bf16.mxu0 %v5155_v34  ;;  %v4835_v18 = vpack.c.bf16 %v409_v15, %v408_v14  ;;  %v4871_v8 = vpack.c.bf16 %v575_v46, %v574_v43  ;;  %v579_v13 = vld [vmem:[%s6240_s4 + $0x38] sm:$0xff]  ;;  %v580_v15 = vld [vmem:[%s6240_s4 + $0x40] sm:$0xff] }
  0x4a   :  { %4786 = vmatprep.subr.bf16.mxu1 %v4785_v21  ;;  %v410_v21 = vld [vmem:[%s6239_s3 + $0xc0] sm:$0xff]  ;;  %v4877_v14 = vpack.c.bf16 %v579_v13, %v578_v12  ;;  %v583_v19 = vld [vmem:[%s6240_s4 + $0x58] sm:$0xff]  ;;  %v772_v13 = vld [vmem:[%s6242_s6 + $0x70] sm:$0xff] }
  0x4b   :  { %v851_v54 = vld [vmem:[%s6242_s6 + $0x98] sm:$0xff] }
  0x4c   :  { %4816 = vmatpush1.bf16.msra.mxu0 %v4815_v22  ;;  %v411_v22 = vld [vmem:[%s6239_s3 + $0xc8] sm:$0xff] }
  0x4d   :  { %4817 = vmatprep.subr.bf16.mxu0 %v5155_v34  ;;  %4788 = vmatpush1.bf16.msra.mxu1 %v4787_v26  ;;  %v4839_v24 = vpack.c.bf16 %v411_v22, %v410_v21  ;;  %v395_v26 = vld [vmem:[%s6239_s3 + $0x48] sm:$0xff]  ;;  %v584_v21 = vld [vmem:[%s6240_s4 + $0x60] sm:$0xff] }
  0x4e   :  { %4790 = vmatprep.subr.bf16.mxu1 %v4789_v31  ;;  %v4841_v29 = vpack.c.bf16 %v395_v26, %v394_v25  ;;  %v396_v31 = vld [vmem:[%s6239_s3 + $0x50] sm:$0xff]  ;;  %v585_v22 = vld [vmem:[%s6240_s4 + $0x68] sm:$0xff]  ;;  %v587_v25 = vld [vmem:[%s6240_s4 + $0x78] sm:$0xff] }
  0x50   :  { %4819 = vmatpush1.bf16.msra.mxu0 %v4818_v28  ;;  %v413_v28 = vld [vmem:[%s6239_s3 + $0xd8] sm:$0xff] }
  0x51   :  { %4820 = vmatprep.subr.bf16.mxu0 %v5155_v34  ;;  %4792 = vmatpush1.bf16.msra.mxu1 %v4791_v36  ;;  %v4843_v30 = vpack.c.bf16 %v413_v28, %v412_v27  ;;  %v4845_v36 = vpack.c.bf16 %v397_v32, %v396_v31  ;;  %v682_v27 = vld [vmem:[%s6242_s6] sm:$0xff]  ;;  %v683_v28 = vld [vmem:[%s6242_s6 + $0x8] sm:$0xff]  ;;  %v685_v31 = vld [vmem:[%s6242_s6 + $0x18] sm:$0xff] }
  0x52   :  { %4824 = vmatprep.subr.bf16.mxu1 %v4823_v41  ;;  %v424_v41 = vld [vmem:[%s6239_s3 + $0x130] sm:$0xff] }
  0x54   :  { %4822 = vmatpush1.bf16.msra.mxu0 %v4821_v38  ;;  %v398_v38 = vld [vmem:[%s6239_s3 + $0x60] sm:$0xff] }
  0x55   :  { %4855 = vmatprep.subr.bf16.mxu0 %v5155_v34  ;;  %v4849_v40 = vpack.c.bf16 %v399_v39, %v398_v38 }
 0x102   :  { %v153_v49 = vpop.f32.mrb[0].mxu0 }
 0x103   :  { %v154_v51 = vadd.f32 %v153_v49, %v69_v47  ;;  %v155_v52 = vpop.f32.mrb[1].mxu0  ;;  %v4865_v47 = vpack.c.bf16 %v425_v45, %v424_v41  ;;  %v417_v49 = vld [vmem:[%s6239_s3 + $0xf8] sm:$0xff] }
 0x104   :  { %v156_v56 = vadd.f32 %v155_v52, %v73_v48  ;;  %v416_v48 = vld [vmem:[%s6239_s3 + $0xf0] sm:$0xff]  ;;  %v401_v52 = vld [vmem:[%s6239_s3 + $0x78] sm:$0xff] }
 0x105   :  { %v158_v63 = vmax.f32 %v154_v51, 0.0  ;;  %v4851_v50 = vpack.c.bf16 %v417_v49, %v416_v48  ;;  %v400_v51 = vld [vmem:[%s6239_s3 + $0x70] sm:$0xff]  ;;  %v848_v48 = vld [vmem:[%s6242_s6 + $0x80] sm:$0xff]  ;;  %v849_v49 = vld [vmem:[%s6242_s6 + $0x88] sm:$0xff] }
 0x106   :  { %v159_v59 = vmax.f32 %v156_v56, 0.0  ;;  %v4853_v53 = vpack.c.bf16 %v401_v52, %v400_v51  ;;  %v226_v56 = vrot.slane %v221_v55, %v68_v44  ;;  %v4916_v51 = vpack.c.bf16 %v849_v49, %v848_v48 }
 0x108   :  { %4078 = vmatprep.mubr.msk.f32.mxu1 %vm238_vm2, %v159_v59  ;;  %4079 = vmatprep.mubr.msk.f32.mxu0 %vm238_vm2, %v159_v59  ;;  %v572_v59 = vld [vmem:[%s6240_s4] sm:$0xff] }
 0x109   :  { %307 = vmatmul.mubr.f32.vlgmr.msra.gmra.mrb[0].mxu1 %v158_v63  ;;  %378 = vmatmul.mubr.f32.vlgmr.msra.gmra.mrb[2].mxu0 %v158_v63 }
 0x10a   :  { %4826 = vmatpush3.bf16.msra.mxu1 %v4825_v60  ;;  %4857 = vmatpush3.bf16.msra.mxu0 %v4856_v62  ;;  %v573_v60 = vld [vmem:[%s6240_s4 + $0x8] sm:$0xff] }
 0x10b   :  { %4828 = vmatprep.subr.bf16.mxu1 %v4827_v1  ;;  %4858 = vmatprep.subr.bf16.mxu0 %v5155_v34  ;;  %v4868_v44 = vpack.c.bf16 %v573_v60, %v572_v59  ;;  %v688_v59 = vld [vmem:[%s6242_s6 + $0x30] sm:$0xff]  ;;  %v689_v60 = vld [vmem:[%s6242_s6 + $0x38] sm:$0xff] }
 0x10c   :  { %4380 = vmatprep.mubr.msk.f32.mxu0 %vm5156_vm3, %v5154_v0 }
 0x10e   :  { %4830 = vmatpush3.bf16.msra.mxu1 %v4829_v7  ;;  %4860 = vmatpush3.bf16.msra.mxu0 %v4859_v9  ;;  %v576_v9 = vld [vmem:[%s6240_s4 + $0x20] sm:$0xff] }
 0x10f   :  { %4832 = vmatprep.subr.bf16.mxu1 %v4831_v10  ;;  %4861 = vmatprep.subr.bf16.mxu0 %v5155_v34  ;;  %v577_v10 = vld [vmem:[%s6240_s4 + $0x28] sm:$0xff] }
 0x110   :  { %v4874_v11 = vpack.c.bf16 %v577_v10, %v576_v9  ;;  %v770_v10 = vld [vmem:[%s6242_s6 + $0x60] sm:$0xff] }
 0x112   :  { %4834 = vmatpush3.bf16.msra.mxu1 %v4833_v16  ;;  %4863 = vmatpush3.bf16.msra.mxu0 %v4862_v17  ;;  %v581_v16 = vld [vmem:[%s6240_s4 + $0x48] sm:$0xff] }
 0x113   :  { %4836 = vmatprep.subr.bf16.mxu1 %v4835_v18  ;;  %4864 = vmatprep.subr.bf16.mxu0 %v5155_v34  ;;  %v4880_v17 = vpack.c.bf16 %v581_v16, %v580_v15  ;;  %v582_v18 = vld [vmem:[%s6240_s4 + $0x50] sm:$0xff] }
 0x114   :  { %v4883_v20 = vpack.c.bf16 %v583_v19, %v582_v18 }
 0x116   :  { %4838 = vmatpush3.bf16.msra.mxu1 %v4837_v23  ;;  %4866 = vmatpush3.bf16.msra.mxu0 %v4865_v47  ;;  %v4886_v23 = vpack.c.bf16 %v585_v22, %v584_v21  ;;  %v774_v21 = vld [vmem:[#allocation4 + $0x18] ss:$0 sm:$0xff]  ;;  %v856_v22 = vld [vmem:[#allocation4 + $0x19] ss:$0 sm:$0xff] }
 0x117   :  { %4840 = vmatprep.subr.bf16.mxu1 %v4839_v24  ;;  %4867 = vmatprep.subr.bf16.mxu0 %v5155_v34  ;;  %v586_v24 = vld [vmem:[%s6240_s4 + $0x70] sm:$0xff] }
 0x118   :  { %v4889_v26 = vpack.c.bf16 %v587_v25, %v586_v24 }
 0x11a   :  { %4842 = vmatpush3.bf16.msra.mxu1 %v4841_v29  ;;  %v4892_v29 = vpack.c.bf16 %v683_v28, %v682_v27 }
 0x11b   :  { %4844 = vmatprep.subr.bf16.mxu1 %v4843_v30  ;;  %v684_v30 = vld [vmem:[%s6242_s6 + $0x10] sm:$0xff] }
 0x11c   :  { %v4895_v32 = vpack.c.bf16 %v685_v31, %v684_v30 }
 0x11e   :  { %4846 = vmatpush3.bf16.msra.mxu1 %v4845_v36  ;;  %v4898_v36 = vpack.c.bf16 %v687_v35, %v686_v33 }
 0x11f   :  { %4848 = vmatprep.subr.bf16.mxu1 %v4847_v37 }
 0x122   :  { %4850 = vmatpush3.bf16.msra.mxu1 %v4849_v40  ;;  %v426_v40 = vld [vmem:[#allocation4 + $0x2] ss:$0 sm:$0xff] }
 0x123   :  { %4852 = vmatprep.subr.bf16.mxu1 %v4851_v50 }
 0x126   :  { %4854 = vmatpush3.bf16.msra.mxu1 %v4853_v53  ;;  %v850_v53 = vld [vmem:[%s6242_s6 + $0x90] sm:$0xff] }
 0x127   :  { %4891 = vmatprep.subr.bf16.mxu1 %v5155_v34  ;;  %v4919_v55 = vpack.c.bf16 %v851_v54, %v850_v53 }
 0x1dc   :  { %v308_v61 = vpop.f32.mrb[0].mxu1  ;;  %v379_v62 = vpop.f32.mrb[2].mxu0 }
 0x1dd   :  { %v309_v63 = vadd.f32 %v308_v61, %v226_v56  ;;  %v380_v1 = vadd.f32 %v379_v62, %v234_v57  ;;  %v310_v2 = vpop.f32.mrb[1].mxu1  ;;  %v381_v3 = vpop.f32.mrb[3].mxu0  ;;  %v852_v56 = vld [vmem:[%s6242_s6 + $0xa0] sm:$0xff]  ;;  %v853_v57 = vld [vmem:[%s6242_s6 + $0xa8] sm:$0xff]  ;;  %v4901_v61 = vpack.c.bf16 %v689_v60, %v688_v59  ;;  %v854_v62 = vld [vmem:[%s6242_s6 + $0xb0] sm:$0xff] }
 0x1de   :  { %v311_v4 = vadd.f32 %v310_v2, %v230_v58  ;;  %v4922_v58 = vpack.c.bf16 %v853_v57, %v852_v56  ;;  %v588_v2 = vld [vmem:[#allocation4 + $0x3] ss:$0 sm:$0xff]  ;;  %v766_v3 = vld [vmem:[%s6242_s6 + $0x40] sm:$0xff] }
 0x1df   :  { %v385_v5 = vmax.f32 %v380_v1, 0.0  ;;  %v383_v7 = vmax.f32 %v309_v63, 0.0  ;;  %v855_v63 = vld [vmem:[%s6242_s6 + $0xb8] sm:$0xff] }
 0x1e0   :  { %v384_v6 = vmax.f32 %v311_v4, 0.0  ;;  %v4925_v1 = vpack.c.bf16 %v855_v63, %v854_v62  ;;  %v767_v4 = vld [vmem:[%s6242_s6 + $0x48] sm:$0xff] }
 0x1e1   :  { %4381 = vmatmul.mubr.msk.f32.vlgmr.msra.gmra.mrb[4].mxu0 %vm427_vm4, %v385_v5  ;;  %v4904_v46 = vpack.c.bf16 %v767_v4, %v766_v3 }
 0x1e2   :  { %495 = vmatprep.mubr.f32.mxu1 %v384_v6  ;;  %4869 = vmatpush3.bf16.msra.mxu0 %v4868_v44 }
 0x1e3   :  { %496 = vmatmul.mubr.f32.vlgmr.msra.gmra.mrb[2].mxu1 %v383_v7  ;;  %4870 = vmatprep.subr.bf16.mxu0 %v5155_v34  ;;  %v768_v7 = vld [vmem:[%s6242_s6 + $0x50] sm:$0xff] }
 0x1e4   :  { %4415 = vmatprep.mubr.msk.f32.mxu0 %vm5156_vm3, %v5154_v0  ;;  %4434 = vmatprep.mubr.msk.f32.mxu1 %vm5156_vm3, %v5154_v0 }
 0x1e5   :  { %4893 = vmatpush3.bf16.msra.mxu1 %v4892_v29 }
 0x1e6   :  { %4872 = vmatpush3.bf16.msra.mxu0 %v4871_v8  ;;  %4894 = vmatprep.subr.bf16.mxu1 %v5155_v34  ;;  %v769_v8 = vld [vmem:[%s6242_s6 + $0x58] sm:$0xff] }
 0x1e7   :  { %4873 = vmatprep.subr.bf16.mxu0 %v5155_v34  ;;  %v4907_v9 = vpack.c.bf16 %v769_v8, %v768_v7 }
 0x1e9   :  { %4896 = vmatpush3.bf16.msra.mxu1 %v4895_v32 }
 0x1ea   :  { %4875 = vmatpush3.bf16.msra.mxu0 %v4874_v11  ;;  %4897 = vmatprep.subr.bf16.mxu1 %v5155_v34  ;;  %v771_v11 = vld [vmem:[%s6242_s6 + $0x68] sm:$0xff] }
 0x1eb   :  { %4876 = vmatprep.subr.bf16.mxu0 %v5155_v34  ;;  %v4910_v12 = vpack.c.bf16 %v771_v11, %v770_v10 }
 0x1ed   :  { %4899 = vmatpush3.bf16.msra.mxu1 %v4898_v36 }
 0x1ee   :  { %4878 = vmatpush3.bf16.msra.mxu0 %v4877_v14  ;;  %4900 = vmatprep.subr.bf16.mxu1 %v5155_v34  ;;  %v773_v14 = vld [vmem:[%s6242_s6 + $0x78] sm:$0xff] }
 0x1ef   :  { %4879 = vmatprep.subr.bf16.mxu0 %v5155_v34  ;;  %v4913_v15 = vpack.c.bf16 %v773_v14, %v772_v13 }
 0x1f1   :  { %4902 = vmatpush3.bf16.msra.mxu1 %v4901_v61 }
 0x1f2   :  { %4881 = vmatpush3.bf16.msra.mxu0 %v4880_v17  ;;  %4903 = vmatprep.subr.bf16.mxu1 %v5155_v34 }
 0x1f3   :  { %4882 = vmatprep.subr.bf16.mxu0 %v5155_v34 }
 0x1f6   :  { %4884 = vmatpush3.bf16.msra.mxu0 %v4883_v20  ;;  %v5723_v20 = vand.u32 127, %v66_v42  ;;  %v690_v42 = vld [vmem:[#allocation4 + $0x7] ss:$0 sm:$0xff] }
 0x1f7   :  { %4885 = vmatprep.subr.bf16.mxu0 %v5155_v34 }
 0x1f8   :  { %vm667_vm5 = vcmp.ge.s32.totalorder %v5723_v20, 16  ;;  %vm668_vm6 = vcmp.lt.s32.totalorder %v5723_v20, 32  ;;  %vm663_vm7 = vcmp.lt.s32.totalorder %v5723_v20, 16  ;;  %vm672_vm11 = vcmp.ge.s32.totalorder %v5723_v20, 32 }
 0x1f9   :  { %vm669_vm8 = vmand %vm667_vm5, %vm668_vm6  ;;  %vm673_vm12 = vcmp.lt.s32.totalorder %v5723_v20, 48  ;;  %vm677_vm14 = vcmp.ge.s32.totalorder %v5723_v20, 48  ;;  %vm678_vm15 = vcmp.lt.s32.totalorder %v5723_v20, 64 }
 0x1fa   :  { %4887 = vmatpush3.bf16.msra.mxu0 %v4886_v23  ;;  %v5734_v27 = vsel %vm669_vm8, 1.0, %v5154_v0  ;;  %vm674_vm13 = vmand %vm672_vm11, %vm673_vm12 }
 0x1fb   :  { %4888 = vmatprep.subr.bf16.mxu0 %v5155_v34  ;;  %vm679_vm1 = vmand %vm677_vm14, %vm678_vm15 }
 0x1fe   :  { %4890 = vmatpush3.bf16.msra.mxu0 %v4889_v26  ;;  %v5731_v26 = vsel %vm663_vm7, 1.0, %v5154_v0 }
 0x1ff   :  { %4915 = vmatprep.subr.bf16.mxu0 %v5155_v34 }
 0x2b4   :  { %v567_v37 = vpop.f32.mrb[4].mxu0 }
 0x2b5   :  { %v4382_v38 = vpop.f32.mrb[5].mxu0 }
 0x2b6   :  { %v4190_v39 = vpop.f32.mrb[2].mxu1 }
 0x2b7   :  { %v4191_v41 = vpop.f32.mrb[3].mxu1 }
 0x2b8   :  { %v4192_v45 = vadd.f32 %v4191_v41, %v4190_v39 }
 0x2ba   :  { %v498_v47 = vadd.f32 %v4192_v45, %v426_v40 }
 0x2bc   :  { %v568_v50 = vadd.f32 %v567_v37, %v498_v47 }
 0x2be   :  { %v571_v52 = vmax.f32 %v568_v50, 0.0 }
 0x2c0   :  { %4416 = vmatmul.mubr.f32.vlgmr.msra.gmra.mrb[6].mxu0 %v571_v52 }
 0x2c1   :  { %4917 = vmatpush3.bf16.msra.mxu0 %v4916_v51  ;;  %4472 = vmatprep.mubr.msk.f32.mxu0 %vm5156_vm3, %v5154_v0 }
 0x2c2   :  { %4918 = vmatprep.subr.bf16.mxu0 %v5155_v34 }
 0x2c5   :  { %4920 = vmatpush3.bf16.msra.mxu0 %v4919_v55 }
 0x2c6   :  { %4921 = vmatprep.subr.bf16.mxu0 %v5155_v34 }
 0x2c9   :  { %4923 = vmatpush3.bf16.msra.mxu0 %v4922_v58 }
 0x2ca   :  { %4924 = vmatprep.subr.bf16.mxu0 %v5155_v34 }
 0x2cd   :  { %4926 = vmatpush3.bf16.msra.mxu0 %v4925_v1 }
 0x2ce   :  { %4485 = vmatprep.subr.mxu0 %v5154_v0 }
 0x393   :  { %v655_v44 = vpop.f32.mrb[6].mxu0 }
 0x394   :  { %v656_v5 = vadd.f32 %v655_v44, %v588_v2  ;;  %v4417_v43 = vpop.f32.mrb[7].mxu0 }
 0x396   :  { %v659_v6 = vmax.f32 %v656_v5, 0.0 }
 0x398   :  { %4435 = vmatmul.mubr.msk.f32.vlgmr.msra.gmra.mrb[4].mxu1 %vm427_vm4, %v659_v6  ;;  %4473 = vmatmul.mubr.msk.f32.vlgmr.msra.gmra.mrb[8].mxu0 %vm427_vm4, %v659_v6 }
 0x399   :  { %4905 = vmatpush3.bf16.msra.mxu1 %v4904_v46  ;;  %4453 = vmatprep.mubr.msk.f32.mxu1 %vm5156_vm3, %v5154_v0 }
 0x39a   :  { %4906 = vmatprep.subr.bf16.mxu1 %v5155_v34  ;;  %4487 = vmatprep.mubr.msk.f32.mxu0 %vm5156_vm3, %v5154_v0 }
 0x39d   :  { %4908 = vmatpush3.bf16.msra.mxu1 %v4907_v9 }
 0x39e   :  { %4909 = vmatprep.subr.bf16.mxu1 %v5155_v34 }
 0x3a1   :  { %4911 = vmatpush3.bf16.msra.mxu1 %v4910_v12 }
 0x3a2   :  { %4912 = vmatprep.subr.bf16.mxu1 %v5155_v34 }
 0x3a5   :  { %4914 = vmatpush3.bf16.msra.mxu1 %v4913_v15 }
 0x3a6   :  { %4475 = vmatprep.subr.mxu1 %v5154_v0 }
 0x3a8   :  { %4454 = vmatmul.mubr.msk.f32.vlgmr.msra.gmra.mrb[6].mxu1 %vm427_vm4, %v659_v6 }
 0x3a9   :  { %4477 = vmatprep.mubr.msk.f32.mxu1 %vm5156_vm3, %v5154_v0 }
 0x46b   :  { %v760_v16 = vpop.f32.mrb[4].mxu1  ;;  %v923_v17 = vpop.f32.mrb[8].mxu0 }
 0x46c   :  { %v4436_v18 = vpop.f32.mrb[5].mxu1  ;;  %v4474_v19 = vpop.f32.mrb[9].mxu0  ;;  %v5736_v28 = vadd.f32 %v923_v17, %v856_v22  ;;  %v5748_v32 = vadd.f32 %v760_v16, %v690_v42 }
 0x46e   :  { %v1111_v35 = vmul.f32 %v5734_v27, %v5736_v28  ;;  %v5766_v36 = vcombine.high %v5748_v32, %v5748_v32  ;;  %v5771_v37 = vcombine.high %v5736_v28, %v5736_v28 }
 0x470   :  { %v1112_v39 = vmul.f32 %v5734_v27, %v5771_v37 }
 0x47b   :  { %v841_v23 = vpop.f32.mrb[6].mxu1 }
 0x47c   :  { %v5728_v24 = vadd.f32 %v841_v23, %v774_v21  ;;  %v4455_v25 = vpop.f32.mrb[7].mxu1  ;;  %v932_v21 = vmul.f32 %v5731_v26, %v5736_v28 }
 0x47e   :  { %v5740_v29 = vcombine.high %v5728_v24, %v5728_v24  ;;  %v930_v30 = vmul.f32 %v5731_v26, %v5728_v24  ;;  %v1109_v31 = vmul.f32 %v5734_v27, %v5728_v24 }
 0x480   :  { %4476 = vmatpush3.xpose.msk.msra.mxu1 %vm427_vm4, %v930_v30  ;;  %4486 = vmatpush3.xpose.msk.msra.mxu0 %vm427_vm4, %v1109_v31  ;;  %v931_v33 = vmul.f32 %v5731_v26, %v5740_v29  ;;  %v1110_v38 = vmul.f32 %v5734_v27, %v5740_v29  ;;  %v933_v30 = vmul.f32 %v5731_v26, %v5771_v37  ;;  %v5812_v31 = vsel %vm674_vm13, 1.0, %v5154_v0 }
 0x481   :  { %4480 = vmatprep.subr.mxu1 %v5154_v0  ;;  %4495 = vmatprep.subr.mxu0 %v5154_v0 }
 0x483   :  { %4478 = vmatmul.mubr.msk.f32.vlgmr.msra.gmra.mrb[8].mxu1 %vm427_vm4, %v5748_v32  ;;  %4488 = vmatmul.mubr.msk.f32.vlgmr.msra.gmra.mrb[10].mxu0 %vm427_vm4, %v5748_v32 }
 0x484   :  { %4481 = vmatpush3.xpose.msk.msra.mxu1 %vm427_vm4, %v931_v33  ;;  %4496 = vmatpush3.msk.msra.mxu0 %vm80_vm0, %v1111_v35  ;;  %v1588_v33 = vmul.f32 %v5812_v31, %v5728_v24 }
 0x485   :  { %4482 = vmatprep.mubr.msk.f32.mxu1 %vm5156_vm3, %v5154_v0  ;;  %4490 = vmatprep.subr.mxu1 %v5154_v0 }
 0x486   :  { %4497 = vmatprep.mubr.msk.f32.mxu0 %vm5156_vm3, %v5154_v0  ;;  %4505 = vmatprep.subr.mxu0 %v5154_v0 }
 0x487   :  { %4483 = vmatmul.mubr.msk.f32.vlgmr.msra.gmra.mrb[10].mxu1 %vm427_vm4, %v5766_v36 }
 0x488   :  { %4491 = vmatpush3.xpose.msk.msra.mxu1 %vm427_vm4, %v1110_v38  ;;  %4492 = vmatprep.mubr.msk.f32.mxu1 %vm5156_vm3, %v5154_v0  ;;  %v1590_v38 = vmul.f32 %v5812_v31, %v5736_v28 }
 0x489   :  { %4500 = vmatprep.subr.mxu1 %v5154_v0 }
 0x48b   :  { %4493 = vmatmul.mubr.msk.f32.vlgmr.msra.gmra.mrb[12].mxu1 %vm427_vm4, %v5766_v36 }
 0x48c   :  { %4501 = vmatpush3.msk.msra.mxu1 %vm80_vm0, %v1112_v39  ;;  %4502 = vmatprep.mubr.msk.f32.mxu1 %vm5156_vm3, %v5154_v0 }
 0x48d   :  { %4510 = vmatprep.subr.mxu1 %v5154_v0 }
 0x556   :  { %v1005_v40 = vpop.f32.mrb[8].mxu1  ;;  %v1182_v41 = vpop.f32.mrb[10].mxu0 }
 0x557   :  { %v1084_v45 = vmul.f32 0.25, %v1005_v40  ;;  %v1259_v47 = vmul.f32 0.25, %v1182_v41  ;;  %v4479_v48 = vpop.f32.mrb[9].mxu1  ;;  %v4489_v49 = vpop.f32.mrb[11].mxu0  ;;  %v1589_v40 = vmul.f32 %v5812_v31, %v5740_v29  ;;  %v1591_v41 = vmul.f32 %v5812_v31, %v5771_v37 }
 0x559   :  { %v1087_v50 = vsel %vm1086_vm9, %v1084_v45, -inf  ;;  %v1261_v51 = vsel %vm1086_vm9, %v1259_v47, -inf }
 0x55a   :  { %1088 = vmax.xlane.f32.xlu1 %v1087_v50  ;;  %v1080_v52 = vpop.f32.mrb[10].mxu1  ;;  %1262 = vmax.xlane.f32.xlu0 %v1261_v51 }
 0x55b   :  { %v1085_v53 = vmul.f32 0.25, %v1080_v52  ;;  %v4484_v54 = vpop.f32.mrb[11].mxu1 }
 0x55d   :  { %v1090_v55 = vsel %vm1086_vm9, %v1085_v53, -inf }
 0x55e   :  { %1091 = vmax.xlane.f32.xlu1 %v1090_v55  ;;  %v1255_v56 = vpop.f32.mrb[12].mxu1 }
 0x55f   :  { %v1260_v57 = vmul.f32 0.25, %v1255_v56  ;;  %v4494_v58 = vpop.f32.mrb[13].mxu1 }
 0x561   :  { %v1264_v59 = vsel %vm1086_vm9, %v1260_v57, -inf }
 0x562   :  { %1265 = vmax.xlane.f32.xlu0 %v1264_v59 }
 0x5e7   :  { %v1089_v60 = vpop.xlane.xlu1 %1088  ;;  %v1263_v61 = vpop.xlane.xlu0 %1262 }
 0x5e8   :  { %v1093_v62 = vsub.f32 %v1084_v45, %v1089_v60  ;;  %v1267_v63 = vsub.f32 %v1259_v47, %v1263_v61 }
 0x5ea   :  { %v1269_v1 = vmul.f32 1.442695, %v1267_v63  ;;  %v1095_v2 = vmul.f32 1.442695, %v1093_v62 }
 0x5eb   :  { %v1092_v3 = vpop.xlane.xlu1 %1091 }
 0x5ec   :  { %5032 = vpow2.f32 %v1269_v1  ;;  %v1094_v4 = vsub.f32 %v1085_v53, %v1092_v3 }
 0x5ed   :  { %5034 = vpow2.f32 %v1095_v2 }
 0x5ee   :  { %v1097_v43 = vmul.f32 1.442695, %v1094_v4 }
 0x5ef   :  { %v1266_v44 = vpop.xlane.xlu0 %1265 }
 0x5f0   :  { %v1268_v5 = vsub.f32 %v1260_v57, %v1266_v44  ;;  %v5856_v44 = vsel %vm679_vm1, 1.0, %v5154_v0 }
 0x5f1   :  { %v1918_v20 = vmul.f32 %v5856_v44, %v5736_v28  ;;  %v1919_v28 = vmul.f32 %v5856_v44, %v5771_v37 }
 0x5f2   :  { %v1271_v46 = vmul.f32 1.442695, %v1268_v5  ;;  %v1916_v5 = vmul.f32 %v5856_v44, %v5728_v24  ;;  %v1917_v24 = vmul.f32 %v5856_v44, %v5740_v29 }
 0x5f4   :  { %5036 = vpow2.f32 %v1271_v46 }
 0x5f5   :  { %5038 = vpow2.f32 %v1097_v43 }
 0x5f6   :  { %v5033_v6 = vpop.eup %5032 }
 0x5f7   :  { %v1273_v7 = vsel %vm1086_vm9, %v5033_v6, 0.0  ;;  %v5035_v8 = vpop.eup %5034 }
 0x5f8   :  { %1274 = vadd.xlane.f32.xlu0 %v1273_v7  ;;  %v1099_v9 = vsel %vm1086_vm9, %v5035_v8, 0.0 }
 0x5fc   :  { %1100 = vadd.xlane.f32.xlu0 %v1099_v9 }
 0x5fe   :  { %v5037_v10 = vpop.eup %5036 }
 0x5ff   :  { %v1276_v11 = vsel %vm1086_vm9, %v5037_v10, 0.0  ;;  %v5039_v12 = vpop.eup %5038 }
 0x600   :  { %1277 = vadd.xlane.f32.xlu1 %v1276_v11  ;;  %v1102_v13 = vsel %vm1086_vm9, %v5039_v12, 0.0 }
 0x604   :  { %1103 = vadd.xlane.f32.xlu1 %v1102_v13 }
 0x685   :  { %v1275_v14 = vpop.xlane.xlu0 %1274 }
 0x686   :  { %5040 = vrcp.f32 %v1275_v14 }
 0x689   :  { %v1101_v15 = vpop.xlane.xlu0 %1100 }
 0x68a   :  { %5042 = vrcp.f32 %v1101_v15 }
 0x68d   :  { %v1278_v16 = vpop.xlane.xlu1 %1277 }
 0x68e   :  { %5044 = vrcp.f32 %v1278_v16 }
 0x690   :  { %v5041_v17 = vpop.eup %5040 }
 0x691   :  { %v1104_v18 = vpop.xlane.xlu1 %1103  ;;  %v1280_v19 = vmul.f32 %v5041_v17, %v5033_v6 }
 0x692   :  { %5046 = vrcp.f32 %v1104_v18 }
 0x693   :  { %4498 = vmatmul.mubr.msk.f32.vlgmr.msra.gmra.mrb[12].mxu0 %vm1283_vm10, %v1280_v19 }
 0x694   :  { %4506 = vmatpush3.msk.msra.mxu0 %vm80_vm0, %v932_v21  ;;  %4507 = vmatprep.mubr.msk.f32.mxu0 %vm5156_vm3, %v5154_v0  ;;  %v5043_v22 = vpop.eup %5042 }
 0x695   :  { %4515 = vmatprep.subr.mxu0 %v5154_v0  ;;  %v1106_v42 = vmul.f32 %v5043_v22, %v5035_v8 }
 0x698   :  { %v5045_v23 = vpop.eup %5044 }
 0x699   :  { %v1282_v25 = vmul.f32 %v5045_v23, %v5037_v10  ;;  %v2244_v23 = vld [vmem:[%s6242_s6 + $0xc0] sm:$0xff] }
 0x69b   :  { %4503 = vmatmul.mubr.msk.f32.vlgmr.msra.gmra.mrb[14].mxu1 %vm1283_vm10, %v1282_v25  ;;  %4508 = vmatmul.mubr.msk.f32.vlgmr.msra.gmra.mrb[12].mxu0 %vm1283_vm10, %v1106_v42  ;;  %v2245_v25 = vld [vmem:[%s6242_s6 + $0xc8] sm:$0xff] }
 0x69c   :  { %4511 = vmatpush3.msk.msra.mxu1 %vm80_vm0, %v933_v30  ;;  %4516 = vmatpush3.xpose.msk.msra.mxu0 %vm427_vm4, %v1588_v33  ;;  %v5047_v35 = vpop.eup %5046  ;;  %v4928_v30 = vpack.c.bf16 %v2245_v25, %v2244_v23  ;;  %v2500_v23 = vld [vmem:[%s6242_s6 + $0x1b0] sm:$0xff]  ;;  %v2501_v25 = vld [vmem:[%s6242_s6 + $0x1b8] sm:$0xff] }
 0x69d   :  { %4517 = vmatprep.mubr.msk.f32.mxu0 %vm5156_vm3, %v5154_v0  ;;  %4525 = vmatprep.subr.mxu0 %v5154_v0  ;;  %v1108_v39 = vmul.f32 %v5047_v35, %v5039_v12 }
 0x69e   :  { %4512 = vmatprep.mubr.msk.f32.mxu1 %vm5156_vm3, %v5154_v0  ;;  %4520 = vmatprep.subr.mxu1 %v5154_v0 }
 0x69f   :  { %4518 = vmatmul.mubr.msk.f32.vlgmr.msra.gmra.mrb[14].mxu0 %vm427_vm4, %v5748_v32 }
 0x6a0   :  { %4526 = vmatpush3.msk.msra.mxu0 %vm80_vm0, %v1590_v38  ;;  %4527 = vmatprep.mubr.msk.f32.mxu0 %vm5156_vm3, %v5154_v0 }
 0x6a1   :  { %4535 = vmatprep.subr.mxu0 %v5154_v0 }
 0x6a3   :  { %4513 = vmatmul.mubr.msk.f32.vlgmr.msra.gmra.mrb[14].mxu1 %vm1283_vm10, %v1108_v39  ;;  %v2246_v39 = vld [vmem:[%s6242_s6 + $0xd0] sm:$0xff] }
 0x6a4   :  { %4521 = vmatpush3.xpose.msk.msra.mxu1 %vm427_vm4, %v1589_v40  ;;  %4522 = vmatprep.mubr.msk.f32.mxu1 %vm5156_vm3, %v5154_v0  ;;  %v2247_v40 = vld [vmem:[%s6242_s6 + $0xd8] sm:$0xff] }
 0x6a5   :  { %4530 = vmatprep.subr.mxu1 %v5154_v0 }
 0x6a7   :  { %4523 = vmatmul.mubr.msk.f32.vlgmr.msra.gmra.mrb[16].mxu1 %vm427_vm4, %v5766_v36 }
 0x6a8   :  { %4531 = vmatpush3.msk.msra.mxu1 %vm80_vm0, %v1591_v41  ;;  %4532 = vmatprep.mubr.msk.f32.mxu1 %vm5156_vm3, %v5154_v0  ;;  %v4931_v41 = vpack.c.bf16 %v2247_v40, %v2246_v39 }
 0x6a9   :  { %4540 = vmatprep.subr.mxu1 %v5154_v0 }
 0x772   :  { %v1661_v45 = vpop.f32.mrb[14].mxu0 }
 0x773   :  { %v1738_v47 = vmul.f32 0.25, %v1661_v45  ;;  %v4519_v48 = vpop.f32.mrb[15].mxu0  ;;  %v2248_v45 = vld [vmem:[%s6242_s6 + $0xe0] sm:$0xff] }
 0x775   :  { %v1740_v49 = vsel %vm1086_vm9, %v1738_v47, -inf }
 0x776   :  { %1741 = vmax.xlane.f32.xlu0 %v1740_v49  ;;  %v2250_v49 = vld [vmem:[%s6242_s6 + $0xf0] sm:$0xff] }
 0x77a   :  { %v1734_v50 = vpop.f32.mrb[16].mxu1 }
 0x77b   :  { %v1739_v51 = vmul.f32 0.25, %v1734_v50  ;;  %v4524_v52 = vpop.f32.mrb[17].mxu1  ;;  %v2251_v50 = vld [vmem:[%s6242_s6 + $0xf8] sm:$0xff] }
 0x77c   :  { %v2328_v52 = vld [vmem:[%s6242_s6 + $0x100] sm:$0xff] }
 0x77d   :  { %v1743_v53 = vsel %vm1086_vm9, %v1739_v51, -inf }
 0x77e   :  { %1744 = vmax.xlane.f32.xlu1 %v1743_v53  ;;  %v2329_v53 = vld [vmem:[%s6242_s6 + $0x108] sm:$0xff] }
 0x803   :  { %v1742_v54 = vpop.xlane.xlu0 %1741 }
 0x804   :  { %v1746_v55 = vsub.f32 %v1738_v47, %v1742_v54  ;;  %v2249_v47 = vld [vmem:[%s6242_s6 + $0xe8] sm:$0xff]  ;;  %v4940_v54 = vpack.c.bf16 %v2329_v53, %v2328_v52 }
 0x805   :  { %v4934_v48 = vpack.c.bf16 %v2249_v47, %v2248_v45  ;;  %v2502_v53 = vld [vmem:[#allocation4 + $0x1d] ss:$0 sm:$0xff] }
 0x806   :  { %v1748_v56 = vmul.f32 1.442695, %v1746_v55  ;;  %v2330_v55 = vld [vmem:[%s6242_s6 + $0x110] sm:$0xff] }
 0x808   :  { %5048 = vpow2.f32 %v1748_v56  ;;  %v2331_v56 = vld [vmem:[%s6242_s6 + $0x118] sm:$0xff] }
 0x80b   :  { %v1745_v57 = vpop.xlane.xlu1 %1744 }
 0x80c   :  { %v1747_v58 = vsub.f32 %v1739_v51, %v1745_v57  ;;  %v4937_v51 = vpack.c.bf16 %v2251_v50, %v2250_v49  ;;  %v4943_v57 = vpack.c.bf16 %v2331_v56, %v2330_v55 }
 0x80e   :  { %v1750_v59 = vmul.f32 1.442695, %v1747_v58  ;;  %v2332_v58 = vld [vmem:[%s6242_s6 + $0x120] sm:$0xff] }
 0x810   :  { %5050 = vpow2.f32 %v1750_v59  ;;  %v2333_v59 = vld [vmem:[%s6242_s6 + $0x128] sm:$0xff] }
 0x812   :  { %v5049_v60 = vpop.eup %5048 }
 0x813   :  { %v1752_v61 = vsel %vm1086_vm9, %v5049_v60, 0.0 }
 0x814   :  { %1753 = vadd.xlane.f32.xlu0 %v1752_v61  ;;  %v2334_v61 = vld [vmem:[%s6242_s6 + $0x130] sm:$0xff] }
 0x81a   :  { %v5051_v62 = vpop.eup %5050 }
 0x81b   :  { %v1755_v63 = vsel %vm1086_vm9, %v5051_v62, 0.0 }
 0x81c   :  { %1756 = vadd.xlane.f32.xlu1 %v1755_v63 }
 0x8a1   :  { %v1754_v1 = vpop.xlane.xlu0 %1753 }
 0x8a2   :  { %5052 = vrcp.f32 %v1754_v1 }
 0x8a9   :  { %v1757_v2 = vpop.xlane.xlu1 %1756 }
 0x8aa   :  { %5054 = vrcp.f32 %v1757_v2 }
 0x8ac   :  { %v5053_v3 = vpop.eup %5052 }
 0x8ad   :  { %v1759_v4 = vmul.f32 %v5053_v3, %v5049_v60  ;;  %v4946_v60 = vpack.c.bf16 %v2333_v59, %v2332_v58  ;;  %v2412_v3 = vld [vmem:[%s6242_s6 + $0x140] sm:$0xff] }
 0x8af   :  { %4528 = vmatmul.mubr.msk.f32.vlgmr.msra.gmra.mrb[12].mxu0 %vm1283_vm10, %v1759_v4  ;;  %v2413_v4 = vld [vmem:[%s6242_s6 + $0x148] sm:$0xff] }
 0x8b0   :  { %4536 = vmatpush3.xpose.msk.msra.mxu0 %vm427_vm4, %v1916_v5  ;;  %4537 = vmatprep.mubr.msk.f32.mxu0 %vm5156_vm3, %v5154_v0 }
 0x8b1   :  { %4545 = vmatprep.subr.mxu0 %v5154_v0 }
 0x8b3   :  { %4538 = vmatmul.mubr.msk.f32.vlgmr.msra.gmra.mrb[16].mxu0 %vm427_vm4, %v5748_v32 }
 0x8b4   :  { %v5055_v43 = vpop.eup %5054  ;;  %4546 = vmatpush3.msk.msra.mxu0 %vm80_vm0, %v1918_v20  ;;  %4547 = vmatprep.mubr.msk.f32.mxu0 %vm5156_vm3, %v5154_v0  ;;  %v4952_v20 = vpack.c.bf16 %v2413_v4, %v2412_v3 }
 0x8b5   :  { %v1761_v46 = vmul.f32 %v5055_v43, %v5051_v62  ;;  %4927 = vmatprep.subr.bf16.mxu0 %v5155_v34  ;;  %v2335_v62 = vld [vmem:[%s6242_s6 + $0x138] sm:$0xff] }
 0x8b6   :  { %v4949_v63 = vpack.c.bf16 %v2335_v62, %v2334_v61 }
 0x8b7   :  { %4533 = vmatmul.mubr.msk.f32.vlgmr.msra.gmra.mrb[14].mxu1 %vm1283_vm10, %v1761_v46 }
 0x8b8   :  { %4541 = vmatpush3.xpose.msk.msra.mxu1 %vm427_vm4, %v1917_v24  ;;  %4542 = vmatprep.mubr.msk.f32.mxu1 %vm5156_vm3, %v5154_v0  ;;  %v2414_v24 = vld [vmem:[%s6242_s6 + $0x150] sm:$0xff] }
 0x8b9   :  { %4550 = vmatprep.subr.mxu1 %v5154_v0 }
 0x8bb   :  { %4543 = vmatmul.mubr.msk.f32.vlgmr.msra.gmra.mrb[18].mxu1 %vm427_vm4, %v5766_v36 }
 0x8bc   :  { %4551 = vmatpush3.msk.msra.mxu1 %vm80_vm0, %v1919_v28  ;;  %4552 = vmatprep.mubr.msk.f32.mxu1 %vm5156_vm3, %v5154_v0  ;;  %v2415_v28 = vld [vmem:[%s6242_s6 + $0x158] sm:$0xff] }
 0x8bd   :  { %4939 = vmatprep.subr.bf16.mxu1 %v5155_v34 }
 0x986   :  { %v1989_v29 = vpop.f32.mrb[16].mxu0 }
 0x987   :  { %v2066_v32 = vmul.f32 0.25, %v1989_v29  ;;  %v4539_v6 = vpop.f32.mrb[17].mxu0  ;;  %v4955_v29 = vpack.c.bf16 %v2415_v28, %v2414_v24 }
 0x988   :  { %v2417_v6 = vld [vmem:[%s6242_s6 + $0x168] sm:$0xff] }
 0x989   :  { %v2068_v7 = vsel %vm1086_vm9, %v2066_v32, -inf }
 0x98a   :  { %2069 = vmax.xlane.f32.xlu0 %v2068_v7 }
 0x98e   :  { %v2062_v8 = vpop.f32.mrb[18].mxu1 }
 0x98f   :  { %v2067_v9 = vmul.f32 0.25, %v2062_v8  ;;  %v4544_v10 = vpop.f32.mrb[19].mxu1  ;;  %v2418_v8 = vld [vmem:[%s6242_s6 + $0x170] sm:$0xff] }
 0x991   :  { %v2071_v37 = vsel %vm1086_vm9, %v2067_v9, -inf }
 0x992   :  { %2072 = vmax.xlane.f32.xlu1 %v2071_v37  ;;  %v2494_v37 = vld [vmem:[%s6242_s6 + $0x180] sm:$0xff] }
 0xa17   :  { %v2070_v36 = vpop.xlane.xlu0 %2069 }
 0xa18   :  { %v2074_v11 = vsub.f32 %v2066_v32, %v2070_v36  ;;  %v2416_v32 = vld [vmem:[%s6242_s6 + $0x160] sm:$0xff]  ;;  %v2495_v36 = vld [vmem:[%s6242_s6 + $0x188] sm:$0xff] }
 0xa19   :  { %v4958_v7 = vpack.c.bf16 %v2417_v6, %v2416_v32 }
 0xa1a   :  { %v2076_v12 = vmul.f32 1.442695, %v2074_v11  ;;  %v2252_v11 = vld [vmem:[#allocation4 + $0x1a] ss:$0 sm:$0xff] }
 0xa1c   :  { %5056 = vpow2.f32 %v2076_v12 }
 0xa1f   :  { %v2073_v13 = vpop.xlane.xlu1 %2072 }
 0xa20   :  { %v2075_v14 = vsub.f32 %v2067_v9, %v2073_v13  ;;  %v2419_v9 = vld [vmem:[%s6242_s6 + $0x178] sm:$0xff]  ;;  %v4964_v13 = vpack.c.bf16 %v2495_v36, %v2494_v37 }
 0xa21   :  { %v4961_v10 = vpack.c.bf16 %v2419_v9, %v2418_v8 }
 0xa22   :  { %v2078_v15 = vmul.f32 1.442695, %v2075_v14 }
 0xa24   :  { %5058 = vpow2.f32 %v2078_v15 }
 0xa26   :  { %v5057_v16 = vpop.eup %5056 }
 0xa27   :  { %v2080_v17 = vsel %vm1086_vm9, %v5057_v16, 0.0 }
 0xa28   :  { %2081 = vadd.xlane.f32.xlu0 %v2080_v17  ;;  %v2497_v17 = vld [vmem:[%s6242_s6 + $0x198] sm:$0xff] }
 0xa2e   :  { %v5059_v18 = vpop.eup %5058 }
 0xa2f   :  { %v2083_v19 = vsel %vm1086_vm9, %v5059_v18, 0.0 }
 0xa30   :  { %2084 = vadd.xlane.f32.xlu1 %v2083_v19  ;;  %v2498_v19 = vld [vmem:[%s6242_s6 + $0x1a0] sm:$0xff] }
 0xab5   :  { %v2082_v21 = vpop.xlane.xlu0 %2081 }
 0xab6   :  { %5060 = vrcp.f32 %v2082_v21  ;;  %v2499_v21 = vld [vmem:[%s6242_s6 + $0x1a8] sm:$0xff] }
 0xabd   :  { %v2085_v22 = vpop.xlane.xlu1 %2084 }
 0xabe   :  { %5062 = vrcp.f32 %v2085_v22  ;;  %v4970_v22 = vpack.c.bf16 %v2499_v21, %v2498_v19 }
 0xac0   :  { %v5061_v42 = vpop.eup %5060 }
 0xac1   :  { %v2087_v33 = vmul.f32 %v5061_v42, %v5057_v16  ;;  %v2496_v16 = vld [vmem:[%s6242_s6 + $0x190] sm:$0xff]  ;;  %v4973_v42 = vpack.c.bf16 %v2501_v25, %v2500_v23 }
 0xac3   :  { %4548 = vmatmul.mubr.msk.f32.vlgmr.msra.gmra.mrb[12].mxu0 %vm1283_vm10, %v2087_v33 }
 0xac4   :  { %4929 = vmatpush3.bf16.msra.mxu0 %v4928_v30  ;;  %4571 = vmatprep.mubr.msk.f32.mxu0 %vm5156_vm3, %v5154_v0  ;;  %v2420_v30 = vld [vmem:[#allocation4 + $0x1c] ss:$0 sm:$0xff] }
 0xac5   :  { %4930 = vmatprep.subr.bf16.mxu0 %v5155_v34 }
 0xac8   :  { %v5063_v35 = vpop.eup %5062  ;;  %4932 = vmatpush3.bf16.msra.mxu0 %v4931_v41 }
 0xac9   :  { %v2089_v38 = vmul.f32 %v5063_v35, %v5059_v18  ;;  %4933 = vmatprep.subr.bf16.mxu0 %v5155_v34  ;;  %v4967_v18 = vpack.c.bf16 %v2497_v17, %v2496_v16 }
 0xacb   :  { %4553 = vmatmul.mubr.msk.f32.vlgmr.msra.gmra.mrb[14].mxu1 %vm1283_vm10, %v2089_v38  ;;  %v2336_v38 = vld [vmem:[#allocation4 + $0x1b] ss:$0 sm:$0xff] }
 0xacc   :  { %4590 = vmatprep.mubr.msk.f32.mxu1 %vm5156_vm3, %v5154_v0  ;;  %4935 = vmatpush3.bf16.msra.mxu0 %v4934_v48 }
 0xacd   :  { %4936 = vmatprep.subr.bf16.mxu0 %v5155_v34  ;;  %4941 = vmatpush3.bf16.msra.mxu1 %v4940_v54 }
 0xace   :  { %4942 = vmatprep.subr.bf16.mxu1 %v5155_v34 }
 0xad0   :  { %4938 = vmatpush3.bf16.msra.mxu0 %v4937_v51 }
 0xad1   :  { %4951 = vmatprep.subr.bf16.mxu0 %v5155_v34  ;;  %4944 = vmatpush3.bf16.msra.mxu1 %v4943_v57 }
 0xad2   :  { %4945 = vmatprep.subr.bf16.mxu1 %v5155_v34 }
 0xad5   :  { %4947 = vmatpush3.bf16.msra.mxu1 %v4946_v60 }
 0xad6   :  { %4948 = vmatprep.subr.bf16.mxu1 %v5155_v34 }
 0xad9   :  { %4950 = vmatpush3.bf16.msra.mxu1 %v4949_v63 }
 0xada   :  { %4963 = vmatprep.subr.bf16.mxu1 %v5155_v34 }
 0xb96   :  { %v2162_v1 = vpop.f32.mrb[12].mxu0 }
 0xb97   :  { %v4549_v2 = vpop.f32.mrb[13].mxu0 }
 0xb9e   :  { %v2238_v5 = vpop.f32.mrb[14].mxu1 }
 0xb9f   :  { %v2255_v43 = vcombine.low %v2162_v1, %v2238_v5  ;;  %v4554_v46 = vpop.f32.mrb[15].mxu1 }
 0xba1   :  { %4572 = vmatmul.mubr.msk.f32.vlgmr.msra.gmra.mrb[18].mxu0 %vm427_vm4, %v2255_v43 }
 0xba2   :  { %4953 = vmatpush3.bf16.msra.mxu0 %v4952_v20  ;;  %4609 = vmatprep.mubr.msk.f32.mxu0 %vm5156_vm3, %v5154_v0 }
 0xba3   :  { %4954 = vmatprep.subr.bf16.mxu0 %v5155_v34 }
 0xba6   :  { %4956 = vmatpush3.bf16.msra.mxu0 %v4955_v29 }
 0xba7   :  { %4957 = vmatprep.subr.bf16.mxu0 %v5155_v34 }
 0xbaa   :  { %4959 = vmatpush3.bf16.msra.mxu0 %v4958_v7 }
 0xbab   :  { %4960 = vmatprep.subr.bf16.mxu0 %v5155_v34 }
 0xbae   :  { %4962 = vmatpush3.bf16.msra.mxu0 %v4961_v10 }
 0xbaf   :  { %4631 = vmatprep.subr.mxu0 %v5154_v0 }
 0xc74   :  { %v2324_v12 = vpop.f32.mrb[18].mxu0 }
 0xc75   :  { %v2325_v14 = vadd.f32 %v2324_v12, %v2252_v11  ;;  %v4573_v15 = vpop.f32.mrb[19].mxu0 }
 0xc77   :  { %4591 = vmatmul.mubr.msk.f32.vlgmr.msra.gmra.mrb[20].mxu1 %vm427_vm4, %v2325_v14  ;;  %4610 = vmatmul.mubr.msk.f32.vlgmr.msra.gmra.mrb[20].mxu0 %vm427_vm4, %v2325_v14 }
 0xc78   :  { %4965 = vmatpush3.bf16.msra.mxu1 %v4964_v13  ;;  %4628 = vmatprep.mubr.msk.f32.mxu1 %vm5156_vm3, %v5154_v0 }
 0xc79   :  { %4966 = vmatprep.subr.bf16.mxu1 %v5155_v34  ;;  %4633 = vmatprep.mubr.msk.f32.mxu0 %vm5156_vm3, %v5154_v0 }
 0xc7c   :  { %4968 = vmatpush3.bf16.msra.mxu1 %v4967_v18 }
 0xc7d   :  { %4969 = vmatprep.subr.bf16.mxu1 %v5155_v34 }
 0xc80   :  { %4971 = vmatpush3.bf16.msra.mxu1 %v4970_v22 }
 0xc81   :  { %4972 = vmatprep.subr.bf16.mxu1 %v5155_v34 }
 0xc84   :  { %4974 = vmatpush3.bf16.msra.mxu1 %v4973_v42 }
 0xc85   :  { %4636 = vmatprep.subr.mxu1 %v5154_v0 }
 0xc87   :  { %4629 = vmatmul.mubr.msk.f32.vlgmr.msra.gmra.mrb[22].mxu1 %vm427_vm4, %v2325_v14 }
 0xc88   :  { %4638 = vmatprep.mubr.msk.f32.mxu1 %vm5156_vm3, %v5154_v0 }
 0xd4a   :  { %v2406_v33 = vpop.f32.mrb[20].mxu1  ;;  %v2487_v35 = vpop.f32.mrb[20].mxu0 }
 0xd4b   :  { %v6022_v39 = vadd.f32 %v2487_v35, %v2420_v30  ;;  %v4592_v40 = vpop.f32.mrb[21].mxu1  ;;  %v4611_v41 = vpop.f32.mrb[21].mxu0  ;;  %v6030_v48 = vadd.f32 %v2406_v33, %v2336_v38 }
 0xd4d   :  { %v6026_v45 = vcombine.high %v6022_v39, %v6022_v39  ;;  %v2576_v47 = vmul.f32 %v5731_v26, %v6022_v39  ;;  %v2754_v50 = vmul.f32 %v5734_v27, %v6022_v39  ;;  %v6043_v51 = vcombine.high %v6030_v48, %v6030_v48 }
 0xd4f   :  { %4632 = vmatpush3.xpose.msk.msra.mxu0 %vm427_vm4, %v2576_v47  ;;  %v2577_v49 = vmul.f32 %v5731_v26, %v6026_v45  ;;  %v2755_v52 = vmul.f32 %v5734_v27, %v6026_v45 }
 0xd50   :  { %4641 = vmatprep.subr.mxu0 %v5154_v0 }
 0xd51   :  { %4637 = vmatpush3.xpose.msk.msra.mxu1 %vm427_vm4, %v2577_v49 }
 0xd52   :  { %4634 = vmatmul.mubr.msk.f32.vlgmr.msra.gmra.mrb[22].mxu0 %vm427_vm4, %v6030_v48  ;;  %4646 = vmatprep.subr.mxu1 %v5154_v0 }
 0xd53   :  { %4642 = vmatpush3.xpose.msk.msra.mxu0 %vm427_vm4, %v2754_v50  ;;  %4643 = vmatprep.mubr.msk.f32.mxu0 %vm5156_vm3, %v5154_v0 }
 0xd54   :  { %4639 = vmatmul.mubr.msk.f32.vlgmr.msra.gmra.mrb[24].mxu1 %vm427_vm4, %v6043_v51  ;;  %4651 = vmatprep.subr.mxu0 %v5154_v0 }
 0xd55   :  { %4647 = vmatpush3.xpose.msk.msra.mxu1 %vm427_vm4, %v2755_v52  ;;  %4648 = vmatprep.mubr.msk.f32.mxu1 %vm5156_vm3, %v5154_v0 }
 0xd56   :  { %4644 = vmatmul.mubr.msk.f32.vlgmr.msra.gmra.mrb[24].mxu0 %vm427_vm4, %v6030_v48  ;;  %4656 = vmatprep.subr.mxu1 %v5154_v0 }
 0xd57   :  { %4653 = vmatprep.mubr.msk.f32.mxu0 %vm5156_vm3, %v5154_v0 }
 0xd58   :  { %4649 = vmatmul.mubr.msk.f32.vlgmr.msra.gmra.mrb[26].mxu1 %vm427_vm4, %v6043_v51 }
 0xd59   :  { %4658 = vmatprep.mubr.msk.f32.mxu1 %vm5156_vm3, %v5154_v0 }
 0xd5a   :  { %v2569_v54 = vpop.f32.mrb[22].mxu1 }
 0xd5b   :  { %v6066_v55 = vadd.f32 %v2569_v54, %v2502_v53  ;;  %v4630_v56 = vpop.f32.mrb[23].mxu1 }
 0xd5c   :  { %v3233_v56 = vmul.f32 %v5812_v31, %v6026_v45 }
 0xd5d   :  { %v6070_v57 = vcombine.high %v6066_v55, %v6066_v55  ;;  %v2756_v58 = vmul.f32 %v5734_v27, %v6066_v55  ;;  %v2578_v41 = vmul.f32 %v5731_v26, %v6066_v55 }
 0xd5f   :  { %4652 = vmatpush3.msk.msra.mxu0 %vm80_vm0, %v2756_v58  ;;  %v2757_v59 = vmul.f32 %v5734_v27, %v6070_v57  ;;  %v2579_v49 = vmul.f32 %v5731_v26, %v6070_v57  ;;  %v3232_v26 = vmul.f32 %v5812_v31, %v6022_v39  ;;  %v3234_v58 = vmul.f32 %v5812_v31, %v6066_v55 }
 0xd60   :  { %4661 = vmatprep.subr.mxu0 %v5154_v0 }
 0xd61   :  { %4657 = vmatpush3.msk.msra.mxu1 %vm80_vm0, %v2757_v59  ;;  %v3235_v59 = vmul.f32 %v5812_v31, %v6070_v57 }
 0xd62   :  { %4666 = vmatprep.subr.mxu1 %v5154_v0 }
 0xe25   :  { %v2651_v60 = vpop.f32.mrb[22].mxu0 }
 0xe26   :  { %v4635_v61 = vpop.f32.mrb[23].mxu0  ;;  %v2730_v5 = vmul.f32 0.25, %v2651_v60 }
 0xe27   :  { %v2726_v62 = vpop.f32.mrb[24].mxu1 }
 0xe28   :  { %v4640_v63 = vpop.f32.mrb[25].mxu1  ;;  %v2731_v27 = vmul.f32 0.25, %v2726_v62  ;;  %v2732_v28 = vsel %vm1086_vm9, %v2730_v5, -inf }
 0xe29   :  { %v2827_v1 = vpop.f32.mrb[24].mxu0 }
 0xe2a   :  { %v2904_v2 = vmul.f32 0.25, %v2827_v1  ;;  %v4645_v3 = vpop.f32.mrb[25].mxu0  ;;  %v2735_v29 = vsel %vm1086_vm9, %v2731_v27, -inf }
 0xe2b   :  { %v2900_v4 = vpop.f32.mrb[26].mxu1 }
 0xe2c   :  { %v2905_v20 = vmul.f32 0.25, %v2900_v4  ;;  %v4650_v43 = vpop.f32.mrb[27].mxu1  ;;  %v2906_v46 = vsel %vm1086_vm9, %v2904_v2, -inf }
 0xe2d   :  { %2907 = vmax.xlane.f32.xlu0 %v2906_v46 }
 0xe2e   :  { %v2909_v24 = vsel %vm1086_vm9, %v2905_v20, -inf }
 0xe2f   :  { %2910 = vmax.xlane.f32.xlu1 %v2909_v24 }
 0xe31   :  { %2733 = vmax.xlane.f32.xlu0 %v2732_v28 }
 0xe33   :  { %2736 = vmax.xlane.f32.xlu1 %v2735_v29 }
 0xeba   :  { %v2908_v32 = vpop.xlane.xlu0 %2907 }
 0xebb   :  { %v2912_v6 = vsub.f32 %v2904_v2, %v2908_v32 }
 0xebc   :  { %v2911_v7 = vpop.xlane.xlu1 %2910 }
 0xebd   :  { %v2914_v8 = vmul.f32 1.442695, %v2912_v6  ;;  %v2913_v9 = vsub.f32 %v2905_v20, %v2911_v7 }
 0xebe   :  { %v2734_v10 = vpop.xlane.xlu0 %2733 }
 0xebf   :  { %5064 = vpow2.f32 %v2914_v8  ;;  %v2916_v37 = vmul.f32 1.442695, %v2913_v9  ;;  %v2738_v36 = vsub.f32 %v2730_v5, %v2734_v10 }
 0xec0   :  { %v2737_v11 = vpop.xlane.xlu1 %2736 }
 0xec1   :  { %5066 = vpow2.f32 %v2916_v37  ;;  %v2740_v12 = vmul.f32 1.442695, %v2738_v36  ;;  %v2739_v13 = vsub.f32 %v2731_v27, %v2737_v11  ;;  %v3560_v37 = vmul.f32 %v5856_v44, %v6022_v39 }
 0xec2   :  { %v3561_v11 = vmul.f32 %v5856_v44, %v6026_v45  ;;  %v3562_v39 = vmul.f32 %v5856_v44, %v6066_v55  ;;  %v3563_v45 = vmul.f32 %v5856_v44, %v6070_v57 }
 0xec3   :  { %5068 = vpow2.f32 %v2740_v12  ;;  %v2742_v14 = vmul.f32 1.442695, %v2739_v13 }
 0xec5   :  { %5070 = vpow2.f32 %v2742_v14 }
 0xec9   :  { %v5065_v15 = vpop.eup %5064 }
 0xeca   :  { %v2918_v16 = vsel %vm1086_vm9, %v5065_v15, 0.0 }
 0xecb   :  { %v5067_v17 = vpop.eup %5066  ;;  %2919 = vadd.xlane.f32.xlu0 %v2918_v16 }
 0xecc   :  { %v2921_v18 = vsel %vm1086_vm9, %v5067_v17, 0.0 }
 0xecd   :  { %v5069_v19 = vpop.eup %5068  ;;  %2922 = vadd.xlane.f32.xlu1 %v2921_v18 }
 0xece   :  { %v2744_v21 = vsel %vm1086_vm9, %v5069_v19, 0.0 }
 0xecf   :  { %v5071_v22 = vpop.eup %5070  ;;  %2745 = vadd.xlane.f32.xlu0 %v2744_v21 }
 0xed0   :  { %v2747_v23 = vsel %vm1086_vm9, %v5071_v22, 0.0 }
 0xed1   :  { %2748 = vadd.xlane.f32.xlu1 %v2747_v23 }
 0xf58   :  { %v2920_v25 = vpop.xlane.xlu0 %2919 }
 0xf59   :  { %5072 = vrcp.f32 %v2920_v25 }
 0xf5a   :  { %v2923_v42 = vpop.xlane.xlu1 %2922 }
 0xf5b   :  { %5074 = vrcp.f32 %v2923_v42 }
 0xf5c   :  { %v2746_v30 = vpop.xlane.xlu0 %2745 }
 0xf5d   :  { %5076 = vrcp.f32 %v2746_v30 }
 0xf5e   :  { %v2749_v33 = vpop.xlane.xlu1 %2748 }
 0xf5f   :  { %5078 = vrcp.f32 %v2749_v33 }
 0xf63   :  { %v5073_v35 = vpop.eup %5072 }
 0xf64   :  { %v2925_v38 = vmul.f32 %v5073_v35, %v5065_v15  ;;  %v3888_v35 = vld [vmem:[%s6242_s6 + $0x1c0] sm:$0xff] }
 0xf65   :  { %v5075_v40 = vpop.eup %5074 }
 0xf66   :  { %v2927_v47 = vmul.f32 %v5075_v40, %v5067_v17  ;;  %4654 = vmatmul.mubr.msk.f32.vlgmr.msra.gmra.mrb[26].mxu0 %vm1283_vm10, %v2925_v38  ;;  %v3889_v38 = vld [vmem:[%s6242_s6 + $0x1c8] sm:$0xff] }
 0xf67   :  { %4662 = vmatpush3.msk.msra.mxu0 %vm80_vm0, %v2578_v41  ;;  %4663 = vmatprep.mubr.msk.f32.mxu0 %vm5156_vm3, %v5154_v0  ;;  %v5077_v50 = vpop.eup %5076  ;;  %v4976_v41 = vpack.c.bf16 %v3889_v38, %v3888_v35 }
 0xf68   :  { %4659 = vmatmul.mubr.msk.f32.vlgmr.msra.gmra.mrb[28].mxu1 %vm1283_vm10, %v2927_v47  ;;  %4671 = vmatprep.subr.mxu0 %v5154_v0  ;;  %v2751_v53 = vmul.f32 %v5077_v50, %v5069_v19  ;;  %v3891_v50 = vld [vmem:[%s6242_s6 + $0x1d8] sm:$0xff] }
 0xf69   :  { %4667 = vmatpush3.msk.msra.mxu1 %vm80_vm0, %v2579_v49  ;;  %4668 = vmatprep.mubr.msk.f32.mxu1 %vm5156_vm3, %v5154_v0  ;;  %v5079_v52 = vpop.eup %5078  ;;  %v3890_v49 = vld [vmem:[%s6242_s6 + $0x1d0] sm:$0xff] }
 0xf6a   :  { %4676 = vmatprep.subr.mxu1 %v5154_v0  ;;  %v2753_v54 = vmul.f32 %v5079_v52, %v5071_v22 }
 0xf6e   :  { %4664 = vmatmul.mubr.msk.f32.vlgmr.msra.gmra.mrb[26].mxu0 %vm1283_vm10, %v2751_v53 }
 0xf6f   :  { %4672 = vmatpush3.xpose.msk.msra.mxu0 %vm427_vm4, %v3232_v26  ;;  %4673 = vmatprep.mubr.msk.f32.mxu0 %vm5156_vm3, %v5154_v0  ;;  %v4979_v26 = vpack.c.bf16 %v3891_v50, %v3890_v49 }
 0xf70   :  { %4669 = vmatmul.mubr.msk.f32.vlgmr.msra.gmra.mrb[28].mxu1 %vm1283_vm10, %v2753_v54  ;;  %4681 = vmatprep.subr.mxu0 %v5154_v0  ;;  %v3892_v54 = vld [vmem:[%s6242_s6 + $0x1e0] sm:$0xff] }
 0xf71   :  { %4677 = vmatpush3.xpose.msk.msra.mxu1 %vm427_vm4, %v3233_v56  ;;  %4678 = vmatprep.mubr.msk.f32.mxu1 %vm5156_vm3, %v5154_v0  ;;  %v3893_v56 = vld [vmem:[%s6242_s6 + $0x1e8] sm:$0xff] }
 0xf72   :  { %4674 = vmatmul.mubr.msk.f32.vlgmr.msra.gmra.mrb[28].mxu0 %vm427_vm4, %v6030_v48  ;;  %4686 = vmatprep.subr.mxu1 %v5154_v0 }
 0xf73   :  { %4682 = vmatpush3.msk.msra.mxu0 %vm80_vm0, %v3234_v58  ;;  %4683 = vmatprep.mubr.msk.f32.mxu0 %vm5156_vm3, %v5154_v0  ;;  %v4982_v58 = vpack.c.bf16 %v3893_v56, %v3892_v54 }
 0xf74   :  { %4679 = vmatmul.mubr.msk.f32.vlgmr.msra.gmra.mrb[30].mxu1 %vm427_vm4, %v6043_v51  ;;  %4691 = vmatprep.subr.mxu0 %v5154_v0 }
 0xf75   :  { %4687 = vmatpush3.msk.msra.mxu1 %vm80_vm0, %v3235_v59  ;;  %4688 = vmatprep.mubr.msk.f32.mxu1 %vm5156_vm3, %v5154_v0  ;;  %v3894_v59 = vld [vmem:[%s6242_s6 + $0x1f0] sm:$0xff] }
 0xf76   :  { %4696 = vmatprep.subr.mxu1 %v5154_v0 }
0x1045   :  { %v3305_v60 = vpop.f32.mrb[28].mxu0 }
0x1046   :  { %v3382_v61 = vmul.f32 0.25, %v3305_v60  ;;  %v4675_v62 = vpop.f32.mrb[29].mxu0  ;;  %v3895_v60 = vld [vmem:[%s6242_s6 + $0x1f8] sm:$0xff] }
0x1047   :  { %v3378_v63 = vpop.f32.mrb[30].mxu1  ;;  %v3973_v62 = vld [vmem:[%s6241_s5 + $0x8] sm:$0xff] }
0x1048   :  { %v3383_v31 = vmul.f32 0.25, %v3378_v63  ;;  %v4680_v1 = vpop.f32.mrb[31].mxu1  ;;  %v3384_v2 = vsel %vm1086_vm9, %v3382_v61, -inf  ;;  %v3974_v63 = vld [vmem:[%s6241_s5 + $0x10] sm:$0xff] }
0x1049   :  { %3385 = vmax.xlane.f32.xlu0 %v3384_v2  ;;  %v3975_v1 = vld [vmem:[%s6241_s5 + $0x18] sm:$0xff] }
0x104a   :  { %v3387_v3 = vsel %vm1086_vm9, %v3383_v31, -inf  ;;  %v4991_v2 = vpack.c.bf16 %v3975_v1, %v3974_v63 }
0x104b   :  { %3388 = vmax.xlane.f32.xlu1 %v3387_v3  ;;  %v3976_v3 = vld [vmem:[%s6241_s5 + $0x20] sm:$0xff] }
0x10d6   :  { %v3386_v4 = vpop.xlane.xlu0 %3385 }
0x10d7   :  { %v3390_v5 = vsub.f32 %v3382_v61, %v3386_v4  ;;  %v4985_v61 = vpack.c.bf16 %v3895_v60, %v3894_v59  ;;  %v3977_v4 = vld [vmem:[%s6241_s5 + $0x28] sm:$0xff] }
0x10d8   :  { %v3389_v20 = vpop.xlane.xlu1 %3388 }
0x10d9   :  { %v3392_v43 = vmul.f32 1.442695, %v3390_v5  ;;  %v3391_v46 = vsub.f32 %v3383_v31, %v3389_v20  ;;  %v4994_v5 = vpack.c.bf16 %v3977_v4, %v3976_v3 }
0x10db   :  { %5080 = vpow2.f32 %v3392_v43  ;;  %v3394_v27 = vmul.f32 1.442695, %v3391_v46 }
0x10dd   :  { %5082 = vpow2.f32 %v3394_v27 }
0x10e5   :  { %v5081_v24 = vpop.eup %5080 }
0x10e6   :  { %v3396_v28 = vsel %vm1086_vm9, %v5081_v24, 0.0 }
0x10e7   :  { %v5083_v29 = vpop.eup %5082  ;;  %3397 = vadd.xlane.f32.xlu0 %v3396_v28  ;;  %v3978_v28 = vld [vmem:[%s6241_s5 + $0x30] sm:$0xff] }
0x10e8   :  { %v3399_v32 = vsel %vm1086_vm9, %v5083_v29, 0.0 }
0x10e9   :  { %3400 = vadd.xlane.f32.xlu1 %v3399_v32 }
0x1174   :  { %v3398_v6 = vpop.xlane.xlu0 %3397 }
0x1175   :  { %5084 = vrcp.f32 %v3398_v6  ;;  %v3896_v6 = vld [vmem:[#allocation4 + $0x1e] ss:$0 sm:$0xff] }
0x1176   :  { %v3401_v7 = vpop.xlane.xlu1 %3400 }
0x1177   :  { %5086 = vrcp.f32 %v3401_v7 }
0x117f   :  { %v5085_v8 = vpop.eup %5084 }
0x1180   :  { %v3403_v9 = vmul.f32 %v5085_v8, %v5081_v24 }
0x1181   :  { %v5087_v10 = vpop.eup %5086 }
0x1182   :  { %v3405_v36 = vmul.f32 %v5087_v10, %v5083_v29  ;;  %4684 = vmatmul.mubr.msk.f32.vlgmr.msra.gmra.mrb[26].mxu0 %vm1283_vm10, %v3403_v9  ;;  %v3979_v29 = vld [vmem:[%s6241_s5 + $0x38] sm:$0xff]  ;;  %v3980_v9 = vld [vmem:[#allocation4 + $0x4] ss:$0 sm:$0xff] }
0x1183   :  { %4692 = vmatpush3.xpose.msk.msra.mxu0 %vm427_vm4, %v3560_v37  ;;  %4693 = vmatprep.mubr.msk.f32.mxu0 %vm5156_vm3, %v5154_v0  ;;  %v4997_v32 = vpack.c.bf16 %v3979_v29, %v3978_v28 }
0x1184   :  { %4689 = vmatmul.mubr.msk.f32.vlgmr.msra.gmra.mrb[28].mxu1 %vm1283_vm10, %v3405_v36  ;;  %4701 = vmatprep.subr.mxu0 %v5154_v0 }
0x1185   :  { %4697 = vmatpush3.xpose.msk.msra.mxu1 %vm427_vm4, %v3561_v11  ;;  %4698 = vmatprep.mubr.msk.f32.mxu1 %vm5156_vm3, %v5154_v0  ;;  %v4055_v11 = vld [vmem:[#allocation4 + $0x5] ss:$0 sm:$0xff] }
0x1186   :  { %4694 = vmatmul.mubr.msk.f32.vlgmr.msra.gmra.mrb[30].mxu0 %vm427_vm4, %v6030_v48  ;;  %4706 = vmatprep.subr.mxu1 %v5154_v0 }
0x1187   :  { %4702 = vmatpush3.msk.msra.mxu0 %vm80_vm0, %v3562_v39  ;;  %4703 = vmatprep.mubr.msk.f32.mxu0 %vm5156_vm3, %v5154_v0 }
0x1188   :  { %4699 = vmatmul.mubr.msk.f32.vlgmr.msra.gmra.mrb[32].mxu1 %vm427_vm4, %v6043_v51  ;;  %4975 = vmatprep.subr.bf16.mxu0 %v5155_v34 }
0x1189   :  { %4707 = vmatpush3.msk.msra.mxu1 %vm80_vm0, %v3563_v45  ;;  %4708 = vmatprep.mubr.msk.f32.mxu1 %vm5156_vm3, %v5154_v0  ;;  %vm4067_vm0 = vcmask 7168  }
0x118a   :  { %4987 = vmatprep.subr.bf16.mxu1 %v5155_v34 }
0x1259   :  { %v3633_v48 = vpop.f32.mrb[30].mxu0 }
0x125a   :  { %v3710_v55 = vmul.f32 0.25, %v3633_v48  ;;  %v4695_v12 = vpop.f32.mrb[31].mxu0 }
0x125b   :  { %v3706_v13 = vpop.f32.mrb[32].mxu1 }
0x125c   :  { %v3711_v44 = vmul.f32 0.25, %v3706_v13  ;;  %v4700_v57 = vpop.f32.mrb[33].mxu1  ;;  %v3712_v14 = vsel %vm1086_vm9, %v3710_v55, -inf }
0x125d   :  { %3713 = vmax.xlane.f32.xlu0 %v3712_v14 }
0x125e   :  { %v3715_v51 = vsel %vm1086_vm9, %v3711_v44, -inf }
0x125f   :  { %3716 = vmax.xlane.f32.xlu1 %v3715_v51 }
0x12ea   :  { %v3714_v15 = vpop.xlane.xlu0 %3713 }
0x12eb   :  { %v3718_v16 = vsub.f32 %v3710_v55, %v3714_v15  ;;  %v4060_v55 = vld [vmem:[#allocation4 + $0x6] ss:$0 sm:$0xff] }
0x12ec   :  { %v3717_v17 = vpop.xlane.xlu1 %3716 }
0x12ed   :  { %v3720_v18 = vmul.f32 1.442695, %v3718_v16  ;;  %v3719_v19 = vsub.f32 %v3711_v44, %v3717_v17 }
0x12ef   :  { %5088 = vpow2.f32 %v3720_v18  ;;  %v3722_v21 = vmul.f32 1.442695, %v3719_v19 }
0x12f1   :  { %5090 = vpow2.f32 %v3722_v21 }
0x12f9   :  { %v5089_v22 = vpop.eup %5088 }
0x12fa   :  { %v3724_v23 = vsel %vm1086_vm9, %v5089_v22, 0.0 }
0x12fb   :  { %v5091_v25 = vpop.eup %5090  ;;  %3725 = vadd.xlane.f32.xlu0 %v3724_v23 }
0x12fc   :  { %v3727_v42 = vsel %vm1086_vm9, %v5091_v25, 0.0 }
0x12fd   :  { %3728 = vadd.xlane.f32.xlu1 %v3727_v42 }
0x1388   :  { %v3726_v30 = vpop.xlane.xlu0 %3725 }
0x1389   :  { %5092 = vrcp.f32 %v3726_v30 }
0x138a   :  { %v3729_v33 = vpop.xlane.xlu1 %3728 }
0x138b   :  { %5094 = vrcp.f32 %v3729_v33 }
0x1393   :  { %v5093_v40 = vpop.eup %5092 }
0x1394   :  { %v3731_v47 = vmul.f32 %v5093_v40, %v5089_v22 }
0x1395   :  { %v5095_v52 = vpop.eup %5094 }
0x1396   :  { %v3733_v53 = vmul.f32 %v5095_v52, %v5091_v25  ;;  %4704 = vmatmul.mubr.msk.f32.vlgmr.msra.gmra.mrb[26].mxu0 %vm1283_vm10, %v3731_v47 }
0x1397   :  { %4977 = vmatpush3.bf16.msra.mxu0 %v4976_v41  ;;  %4727 = vmatprep.mubr.msk.f32.mxu0 %vm5156_vm3, %v5154_v0 }
0x1398   :  { %4709 = vmatmul.mubr.msk.f32.vlgmr.msra.gmra.mrb[28].mxu1 %vm1283_vm10, %v3733_v53  ;;  %4978 = vmatprep.subr.bf16.mxu0 %v5155_v34 }
0x1399   :  { %4746 = vmatprep.mubr.msk.f32.mxu1 %vm5156_vm3, %v5154_v0  ;;  %v3972_v0 = vld [vmem:[%s6241_s5] sm:$0xff] }
0x139a   :  { %v4988_v31 = vpack.c.bf16 %v3973_v62, %v3972_v0 }
0x139b   :  { %4980 = vmatpush3.bf16.msra.mxu0 %v4979_v26 }
0x139c   :  { %4981 = vmatprep.subr.bf16.mxu0 %v5155_v34  ;;  %4989 = vmatpush3.bf16.msra.mxu1 %v4988_v31 }
0x139d   :  { %4990 = vmatprep.subr.bf16.mxu1 %v5155_v34 }
0x139f   :  { %4983 = vmatpush3.bf16.msra.mxu0 %v4982_v58 }
0x13a0   :  { %4984 = vmatprep.subr.bf16.mxu0 %v5155_v34  ;;  %4992 = vmatpush3.bf16.msra.mxu1 %v4991_v2 }
0x13a1   :  { %4993 = vmatprep.subr.bf16.mxu1 %v5155_v34 }
0x13a3   :  { %4986 = vmatpush3.bf16.msra.mxu0 %v4985_v61 }
0x13a4   :  { %4995 = vmatpush3.bf16.msra.mxu1 %v4994_v5 }
0x13a5   :  { %4996 = vmatprep.subr.bf16.mxu1 %v5155_v34 }
0x13a8   :  { %4998 = vmatpush3.bf16.msra.mxu1 %v4997_v32 }
0x1469   :  { %v3806_v20 = vpop.f32.mrb[26].mxu0 }
0x146a   :  { %v4705_v43 = vpop.f32.mrb[27].mxu0 }
0x146b   :  { %v3882_v46 = vpop.f32.mrb[28].mxu1 }
0x146c   :  { %v3899_v27 = vcombine.low %v3806_v20, %v3882_v46  ;;  %v4710_v24 = vpop.f32.mrb[29].mxu1 }
0x146e   :  { %4728 = vmatmul.mubr.msk.f32.vlgmr.msra.gmra.mrb[32].mxu0 %vm427_vm4, %v3899_v27 }
0x1541   :  { %v3968_v7 = vpop.f32.mrb[32].mxu0 }
0x1542   :  { %v3969_v34 = vadd.f32 %v3968_v7, %v3896_v6  ;;  %v4729_v8 = vpop.f32.mrb[33].mxu0 }
0x1544   :  { %4747 = vmatmul.mubr.msk.f32.vlgmr.msra.gmra.mrb[34].mxu1 %vm427_vm4, %v3969_v34 }
0x1617   :  { %v4050_v10 = vpop.f32.mrb[34].mxu1 }
0x1618   :  { %v4051_v37 = vadd.f32 %v4050_v10, %v3980_v9  ;;  %v4748_v36 = vpop.f32.mrb[35].mxu1 }
0x161a   :  { %v4054_v39 = vmax.f32 %v4051_v37, 0.0 }
0x161c   :  { %v4056_v45 = vmul.f32 %v4055_v11, %v4054_v39 }
0x161e   :  { %v4057_v48 = vsel %vm238_vm2, %v4056_v45, 0.0 }
0x161f   :  { %4058 = vadd.xlane.f32.xlu0 %v4057_v48 }
0x16ac   :  { %v4059_v12 = vpop.xlane.xlu0 %4058 }
0x16ad   :  { %v4061_v13 = vadd.f32 %v4060_v55, %v4059_v12 }
0x16af   :  { %v4062_v44 = vsub.f32 0.0, %v4061_v13 }
0x16b1   :  { %v4063_v57 = vmul.f32 1.442695, %v4062_v44 }
0x16b3   :  { %5096 = vpow2.f32 %v4063_v57 }
0x16bd   :  { %v5097_v14 = vpop.eup %5096 }
0x16be   :  { %v4065_v51 = vadd.f32 1.0, %v5097_v14 }
0x16c0   :  { %5098 = vrcp.f32 %v4065_v51 }
0x16ca   :  { %v5099_v15 = vpop.eup %5098 }
0x16cb   :  { %4068 = vst.msk [vmem:[%s6244_s8] sm:$0xff] %vm4067_vm0, %v5099_v15 }
0x16cc   :  { %4073 = vsyncpa [#allocation3], 1 }
0x16cd   :  { %4074 = vsyncpa [#allocation5], 1 }

</bundles_post_ra>
